<compile_context>
chip_gen: v7x
topology: tpu7x:2x2x1
jax: 0.10.0
libtpu: 0.0.40
codegen_flags: <defaults>
</compile_context>

<pallas_src>
import jax
import jax.numpy as jnp
from jax import lax
from jax.experimental import pallas as pl
from jax.experimental.pallas import tpu as pltpu


def make_kernel(B, T, D, M, H, C, K, pad):
    f32 = jnp.float32
    TWOH = 2 * H
    G8 = 8 * H  # fused gate width (both directions, 4 gates each)

    def kernel(xseq_ref, xmeta_ref,
               win_ref, whh_ref, bias_ref,
               convw_ref, convb_ref,
               wattn_ref, battn_ref, vattn_ref,
               wmeta_ref, bmeta_ref,
               wcls_ref, bcls_ref,
               logits_ref, attnw_ref, meta_ref,
               xp_ref, hpad_ref):

        # ---- Fused input projection (both directions, all gates), one matmul ----
        x_flat = xseq_ref[...].reshape(T * B, D)                        # tile-aligned
        xp_ref[...] = (jnp.dot(x_flat, win_ref[...],
                               preferred_element_type=f32)
                       + bias_ref[...]).reshape(T, B, G8)               # (T, B, 8H)

        # Hoist the fused (block-diagonal) recurrent matrix out of the loop.
        whh = whh_ref[...]                                              # (2H, 8H)

        # Zero only the conv padding rows of the pre-padded LSTM-output scratch.
        if pad > 0:
            zrow = jnp.zeros((pad, B, TWOH), f32)
            hpad_ref[0:pad] = zrow
            hpad_ref[T + pad:T + 2 * pad] = zrow

        # Column layout of the fused 8H gates (each block H wide):
        #   [i_f, i_b, f_f, f_b, o_f, o_b, g_f, g_b]
        # -> within each 2H gate-type slab, lanes [0:H] are forward, [H:2H] backward.
        col = lax.broadcasted_iota(jnp.int32, (B, G8), 1)
        fwd_mask = (col % TWOH) < H                                     # fwd columns

        # ---- Bidirectional LSTM, both directions fused in one recurrence --------
        def step(s, carry):
            h, c = carry                                                # (B, 2H) each
            t_b = T - 1 - s
            # fwd gate columns use x_t at t=s, bwd gate columns use x_t at t=T-1-s
            gx = jnp.where(fwd_mask, xp_ref[s], xp_ref[t_b])            # (B, 8H)
            g = gx + jnp.dot(h, whh, preferred_element_type=f32)        # one MXU push
            a = jnp.tanh(g)                                             # ONE EUP launch
            # sigmoid(x) = 0.5*tanh(x/2)+0.5; the /2 is folded into the weights.
            i_g = 0.5 * a[:, 0:TWOH] + 0.5
            f_g = 0.5 * a[:, TWOH:2 * TWOH] + 0.5
            o_g = 0.5 * a[:, 2 * TWOH:3 * TWOH] + 0.5
            n_g = a[:, 3 * TWOH:4 * TWOH]
            c = f_g * c + i_g * n_g                                     # (B, 2H)
            h = o_g * jnp.tanh(c)                                       # (B, 2H)
            # fwd half belongs to time s, bwd half to time T-1-s.
            hpad_ref[pad + s, :, 0:H] = h[:, 0:H]
            hpad_ref[pad + t_b, :, H:TWOH] = h[:, H:TWOH]
            return (h, c)

        zero2 = jnp.zeros((B, TWOH), f32)
        lax.fori_loop(0, T, step, (zero2, zero2),
                      unroll=(T if T <= 16 else 8))

        # ---- Conv1d (padding=K//2) as K shifted slab matmuls --------------------
        convw = convw_ref[...]                                          # (K, 2H, C)
        cnn = jnp.zeros((T * B, C), f32) + convb_ref[...]               # (T*B, C)
        for k in range(K):                                              # K small/static
            slab = hpad_ref[k:k + T].reshape(T * B, TWOH)
            cnn = cnn + jnp.dot(slab, convw[k], preferred_element_type=f32)

        cnn3 = cnn.reshape(T, B, C)                                     # (T, B, C)

        # ---- Additive (Bahdanau) attention, fully batched over time -------------
        u = jnp.tanh(jnp.dot(cnn, wattn_ref[...], preferred_element_type=f32)
                     + battn_ref[...])                                  # (T*B, C)
        scores = jnp.dot(u, vattn_ref[...],                             # MXU, (T*B, 1)
                         preferred_element_type=f32).reshape(T, B, 1)

        m = jnp.max(scores, axis=0, keepdims=True)                      # (1, B, 1)
        e = jnp.exp(scores - m)                                         # (T, B, 1)
        denom = jnp.sum(e, axis=0, keepdims=True)                       # (1, B, 1)
        w = e / denom                                                   # exact softmax

        attn_out = jnp.sum(w * cnn3, axis=0)                            # (B, C)
        attnw_ref[...] = jnp.transpose(w.reshape(T, B))                 # (B, T)

        # ---- Meta branch: relu(Linear) -------------------------------------------
        meta_out = jnp.maximum(
            jnp.dot(xmeta_ref[...], wmeta_ref[...], preferred_element_type=f32)
            + bmeta_ref[...], 0.0)                                      # (B, C)
        meta_ref[...] = meta_out

        # ---- Classifier on concat([attn_out, meta_out]) --------------------------
        wcls = wcls_ref[...]                                            # (2C, 1)
        logits_ref[...] = (jnp.dot(attn_out, wcls[0:C, :], preferred_element_type=f32)
                           + jnp.dot(meta_out, wcls[C:2 * C, :],
                                     preferred_element_type=f32)
                           + bcls_ref[...])                             # (B, 1)

    return kernel


def init_params(key, D, M, H, C, K):
    """Returns (kernel_params, reference_params)."""
    keys = jax.random.split(key, 17)

    def u(k, shape):
        return jax.random.uniform(k, shape, jnp.float32, -0.1, 0.1)

    # PyTorch-layout parameters (gate row order: i, f, g, o).
    w_ih_f = u(keys[0], (4 * H, D)); w_hh_f = u(keys[1], (4 * H, H))
    b_ih_f = u(keys[2], (4 * H,));   b_hh_f = u(keys[3], (4 * H,))
    w_ih_b = u(keys[4], (4 * H, D)); w_hh_b = u(keys[5], (4 * H, H))
    b_ih_b = u(keys[6], (4 * H,));   b_hh_b = u(keys[7], (4 * H,))
    conv_w = u(keys[8], (C, 2 * H, K)); conv_b = u(keys[9], (C,))
    attn_w = u(keys[10], (C, C)); attn_b = u(keys[11], (C,))
    attn_v = u(keys[12], (1, C))                  # Linear(C, 1, bias=False)
    meta_w = u(keys[13], (C, M)); meta_b = u(keys[14], (C,))
    cls_w = u(keys[15], (1, 2 * C)); cls_b = u(keys[16], (1,))

    b_f = b_ih_f + b_hh_f
    b_b = b_ih_b + b_hh_b

    # ---- Fused gate packing for the kernel -----------------------------------
    # Column order: [i_f, i_b, f_f, f_b, o_f, o_b, g_f, g_b]; sigmoid-gate columns
    # (i, f, o) are pre-scaled by 0.5 so a single tanh computes tanh(x/2) for them.
    gate_rows = {"i": slice(0, H), "f": slice(H, 2 * H),
                 "g": slice(2 * H, 3 * H), "o": slice(3 * H, 4 * H)}
    order = ("i", "f", "o", "g")
    scale = {"i": 0.5, "f": 0.5, "o": 0.5, "g": 1.0}
    zHH = jnp.zeros((H, H), jnp.float32)

    win_cols, whh_cols, b_cols = [], [], []
    for gname in order:
        sl = gate_rows[gname]
        sc = scale[gname]
        win_cols += [w_ih_f[sl].T * sc, w_ih_b[sl].T * sc]
        whh_cols += [jnp.concatenate([w_hh_f[sl].T * sc, zHH], axis=0),
                     jnp.concatenate([zHH, w_hh_b[sl].T * sc], axis=0)]
        b_cols += [b_f[sl] * sc, b_b[sl] * sc]

    win = jnp.concatenate(win_cols, axis=1)             # (D, 8H)
    whh = jnp.concatenate(whh_cols, axis=1)             # (2H, 8H) block-diagonal
    bias = jnp.concatenate(b_cols).reshape(1, 8 * H)    # (1, 8H)

    kparams = dict(
        win=win, whh=whh, bias=bias,
        convw=jnp.transpose(conv_w, (2, 1, 0)),          # (K, 2H, C)
        convb=conv_b.reshape(1, C),
        wattn=attn_w.T, battn=attn_b.reshape(1, C), vattn=attn_v.T,   # (C, 1)
        wmeta=meta_w.T, bmeta=meta_b.reshape(1, C),
        wcls=cls_w.T, bcls=cls_b.reshape(1, 1),
    )
    rparams = dict(
        wihf=w_ih_f.T, whhf=w_hh_f.T, bf=b_f,
        wihb=w_ih_b.T, whhb=w_hh_b.T, bb=b_b,
        convw=jnp.transpose(conv_w, (2, 1, 0)), convb=conv_b,
        wattn=attn_w.T, battn=attn_b, vattn=attn_v[0],
        wmeta=meta_w.T, bmeta=meta_b,
        wcls=cls_w.T, bcls=cls_b,
    )
    return kparams, rparams


def forward(x_seq, x_meta, params):
    B, T, D = x_seq.shape
    M = x_meta.shape[1]
    H = params["whh"].shape[0] // 2
    C = params["convw"].shape[2]
    K = params["convw"].shape[0]
    pad = K // 2

    # Pad batch up to a sublane multiple (8): makes every (T,B)->(T*B) reshape
    # tile-aligned; a (2,·) f32 tile already occupies a full vreg so it is free.
    Bp = max(8, -(-B // 8) * 8)
    if Bp != B:
        x_seq = jnp.pad(x_seq, ((0, Bp - B), (0, 0), (0, 0)))
        x_meta = jnp.pad(x_meta, ((0, Bp - B), (0, 0)))

    xseq_tm = jnp.transpose(x_seq, (1, 0, 2))                           # (T, Bp, D)

    args = (xseq_tm, x_meta,
            params["win"], params["whh"], params["bias"],
            params["convw"], params["convb"],
            params["wattn"], params["battn"], params["vattn"],
            params["wmeta"], params["bmeta"],
            params["wcls"], params["bcls"])

    vmem = pl.BlockSpec(memory_space=pltpu.MemorySpace.VMEM)
    kernel = make_kernel(Bp, T, D, M, H, C, K, pad)

    logits, attn_weights, meta_out = pl.pallas_call(
        kernel,
        out_shape=(jax.ShapeDtypeStruct((Bp, 1), jnp.float32),
                   jax.ShapeDtypeStruct((Bp, T), jnp.float32),
                   jax.ShapeDtypeStruct((Bp, C), jnp.float32)),
        in_specs=[vmem] * len(args),
        out_specs=(vmem, vmem, vmem),
        scratch_shapes=[pltpu.VMEM((T, Bp, 8 * H), jnp.float32),        # fused x-proj
                        pltpu.VMEM((T + 2 * pad, Bp, 2 * H), jnp.float32)],  # padded LSTM out
        # Safe on v5e/v6e (128 MiB) and v7x (64 MiB); actual residency << 1 MiB here.
        compiler_params=pltpu.CompilerParams(vmem_limit_bytes=32 * 1024 * 1024),
    )(*args)

    return logits[:B], attn_weights[:B], meta_out[:B]


def reference(x_seq, x_meta, rp, H, C, K, pad):
    """Pure-JAX reference mirroring the PyTorch module semantics."""
    B, T, D = x_seq.shape

    def lstm_dir(wih, whh, b, reverse):
        h = jnp.zeros((B, H)); c = jnp.zeros((B, H))
        out = jnp.zeros((B, T, H))
        ts = range(T - 1, -1, -1) if reverse else range(T)
        for t in ts:
            g = x_seq[:, t, :] @ wih + h @ whh + b
            i = jax.nn.sigmoid(g[:, :H]); f = jax.nn.sigmoid(g[:, H:2 * H])
            n = jnp.tanh(g[:, 2 * H:3 * H]); o = jax.nn.sigmoid(g[:, 3 * H:])
            c = f * c + i * n
            h = o * jnp.tanh(c)
            out = out.at[:, t, :].set(h)
        return out

    hf = lstm_dir(rp["wihf"], rp["whhf"], rp["bf"], False)
    hb = lstm_dir(rp["wihb"], rp["whhb"], rp["bb"], True)
    lstm_out = jnp.concatenate([hf, hb], axis=-1)                       # (B, T, 2H)

    padded = jnp.pad(lstm_out, ((0, 0), (pad, pad), (0, 0)))
    cnn = jnp.zeros((B, T, C)) + rp["convb"]
    for k in range(K):
        cnn = cnn + jnp.einsum("bth,hc->btc", padded[:, k:k + T, :], rp["convw"][k])

    u = jnp.tanh(cnn @ rp["wattn"] + rp["battn"])
    scores = jnp.sum(u * rp["vattn"], axis=-1)                          # (B, T)
    wts = jax.nn.softmax(scores, axis=-1)
    attn_out = jnp.sum(wts[:, :, None] * cnn, axis=1)                   # (B, C)
    meta_out = jax.nn.relu(x_meta @ rp["wmeta"] + rp["bmeta"])
    concat = jnp.concatenate([attn_out, meta_out], axis=-1)
    logits = concat @ rp["wcls"] + rp["bcls"]
    return logits, wts, meta_out


if __name__ == "__main__":
    # Small shapes consistent with the module's forward:
    B, T, D, M = 2, 8, 8, 4        # batch, seq len, input_dim, meta_dim
    H, C, K = 16, 32, 3            # hidden_dim, cnn_out_channels, kernel_size

    key = jax.random.PRNGKey(0)
    k_x, k_m, k_p = jax.random.split(key, 3)
    x_seq = jax.random.normal(k_x, (B, T, D), jnp.float32)
    x_meta = jax.random.normal(k_m, (B, M), jnp.float32)
    kparams, rparams = init_params(k_p, D, M, H, C, K)

    logits, attn_weights, meta_out = forward(x_seq, x_meta, kparams)
    jax.block_until_ready((logits, attn_weights, meta_out))

    assert logits.shape == (B, 1)
    assert attn_weights.shape == (B, T)
    assert meta_out.shape == (B, C)

    # Sanity check against a pure-JAX reference.
    ref_logits, ref_w, ref_meta = reference(x_seq, x_meta, rparams, H, C, K, K // 2)
    assert jnp.max(jnp.abs(logits - ref_logits)) < 1e-3
    assert jnp.max(jnp.abs(attn_weights - ref_w)) < 1e-3
    assert jnp.max(jnp.abs(meta_out - ref_meta)) < 1e-3

    print("KERNEL_OK")
</pallas_src>

<mosaic_0001>
module attributes {stable_mosaic.version = 11 : i64} {
  func.func @kernel(%arg0: memref<8x8x8xf32, #tpu.memory_space<vmem>>, %arg1: memref<8x4xf32, #tpu.memory_space<vmem>>, %arg2: memref<8x128xf32, #tpu.memory_space<vmem>>, %arg3: memref<32x128xf32, #tpu.memory_space<vmem>>, %arg4: memref<1x128xf32, #tpu.memory_space<vmem>>, %arg5: memref<3x32x32xf32, #tpu.memory_space<vmem>>, %arg6: memref<1x32xf32, #tpu.memory_space<vmem>>, %arg7: memref<32x32xf32, #tpu.memory_space<vmem>>, %arg8: memref<1x32xf32, #tpu.memory_space<vmem>>, %arg9: memref<32x1xf32, #tpu.memory_space<vmem>>, %arg10: memref<4x32xf32, #tpu.memory_space<vmem>>, %arg11: memref<1x32xf32, #tpu.memory_space<vmem>>, %arg12: memref<64x1xf32, #tpu.memory_space<vmem>>, %arg13: memref<1x1xf32, #tpu.memory_space<vmem>>, %arg14: memref<8x1xf32, #tpu.memory_space<vmem>>, %arg15: memref<8x8xf32, #tpu.memory_space<vmem>>, %arg16: memref<8x32xf32, #tpu.memory_space<vmem>>, %arg17: memref<8x8x128xf32, #tpu.memory_space<vmem>>, %arg18: memref<10x8x32xf32, #tpu.memory_space<vmem>>) attributes {dimension_semantics = [], scalar_prefetch = 0 : i64, scratch_operands = 2 : i64, tpu.core_type = #tpu.core_type<tc>} {
    %c0 = arith.constant 0 : index
    %c0_0 = arith.constant 0 : index
    %c0_1 = arith.constant 0 : index
    %0 = vector.load %arg0[%c0, %c0_0, %c0_1] : memref<8x8x8xf32, #tpu.memory_space<vmem>>, vector<8x8x8xf32>
    %1 = vector.shape_cast %0 : vector<8x8x8xf32> to vector<64x8xf32>
    %c0_2 = arith.constant 0 : index
    %c0_3 = arith.constant 0 : index
    %2 = vector.load %arg2[%c0_2, %c0_3] : memref<8x128xf32, #tpu.memory_space<vmem>>, vector<8x128xf32>
    %cst = arith.constant dense<0.000000e+00> : vector<64x128xf32>
    %3 = tpu.matmul %1, %2, %cst {dimension_numbers = #tpu.dot_dimension_numbers<[1], [0], [0], [1], [0, 0, 1, 1], [], []>} : vector<64x8xf32>, vector<8x128xf32>, vector<64x128xf32> -> vector<64x128xf32>
    %c0_4 = arith.constant 0 : index
    %c0_5 = arith.constant 0 : index
    %4 = vector.load %arg4[%c0_4, %c0_5] : memref<1x128xf32, #tpu.memory_space<vmem>>, vector<1x128xf32>
    %5 = vector.broadcast %4 : vector<1x128xf32> to vector<64x128xf32>
    %6 = arith.addf %3, %5 : vector<64x128xf32>
    %7 = vector.shape_cast %6 : vector<64x128xf32> to vector<8x8x128xf32>
    %c0_6 = arith.constant 0 : index
    %c0_7 = arith.constant 0 : index
    %c0_8 = arith.constant 0 : index
    %8 = vector.load %arg17[%c0_6, %c0_7, %c0_8] : memref<8x8x128xf32, #tpu.memory_space<vmem>>, vector<8x8x128xf32>
    tpu.vector_store %arg17[%c0_6, %c0_7, %c0_8], %7 {strides = array<i32>} : memref<8x8x128xf32, #tpu.memory_space<vmem>>, vector<8x8x128xf32>,
    %c0_9 = arith.constant 0 : index
    %c0_10 = arith.constant 0 : index
    %9 = vector.load %arg3[%c0_9, %c0_10] : memref<32x128xf32, #tpu.memory_space<vmem>>, vector<32x128xf32>
    %cst_11 = arith.constant 0.000000e+00 : f32
    %10 = vector.broadcast %cst_11 : f32 to vector<1x8x32xf32>
    %c0_12 = arith.constant 0 : index
    %c0_13 = arith.constant 0 : index
    %c0_14 = arith.constant 0 : index
    %11 = vector.load %arg18[%c0_12, %c0_13, %c0_14] : memref<10x8x32xf32, #tpu.memory_space<vmem>>, vector<1x8x32xf32>
    tpu.vector_store %arg18[%c0_12, %c0_13, %c0_14], %10 {strides = array<i32>} : memref<10x8x32xf32, #tpu.memory_space<vmem>>, vector<1x8x32xf32>,
    %c9 = arith.constant 9 : index
    %c0_15 = arith.constant 0 : index
    %c0_16 = arith.constant 0 : index
    %12 = vector.load %arg18[%c9, %c0_15, %c0_16] : memref<10x8x32xf32, #tpu.memory_space<vmem>>, vector<1x8x32xf32>
    tpu.vector_store %arg18[%c9, %c0_15, %c0_16], %10 {strides = array<i32>} : memref<10x8x32xf32, #tpu.memory_space<vmem>>, vector<1x8x32xf32>,
    %13 = tpu.iota {dimensions = array<i32: 1>} : vector<8x128xi32>
    %c32_i32 = arith.constant 32 : i32
    %c0_i32 = arith.constant 0 : i32
    %14 = arith.cmpi eq, %c32_i32, %c0_i32 : i32
    %c1_i32 = arith.constant 1 : i32
    %15 = arith.select %14, %c1_i32, %c32_i32 : i32
    %16 = vector.broadcast %15 : i32 to vector<8x128xi32>
    %17 = arith.remsi %13, %16 : vector<8x128xi32>
    %c0_i32_17 = arith.constant 0 : i32
    %18 = vector.broadcast %c0_i32_17 : i32 to vector<8x128xi32>
    %19 = arith.cmpi ne, %17, %18 : vector<8x128xi32>
    %c0_i32_18 = arith.constant 0 : i32
    %20 = vector.broadcast %c0_i32_18 : i32 to vector<8x128xi32>
    %21 = arith.cmpi slt, %17, %20 : vector<8x128xi32>
    %c0_i32_19 = arith.constant 0 : i32
    %22 = arith.cmpi slt, %15, %c0_i32_19 : i32
    %23 = vector.broadcast %22 : i1 to vector<8x128xi1>
    %24 = vector.broadcast %23 : vector<8x128xi1> to vector<8x128xi1>
    %25 = arith.xori %21, %24 : vector<8x128xi1>
    %26 = arith.andi %25, %19 : vector<8x128xi1>
    %27 = vector.broadcast %15 : i32 to vector<8x128xi32>
    %28 = arith.addi %17, %27 : vector<8x128xi32>
    %29 = arith.select %26, %28, %17 : vector<8x128xi1>, vector<8x128xi32>
    %c16_i32 = arith.constant 16 : i32
    %30 = vector.broadcast %c16_i32 : i32 to vector<8x128xi32>
    %31 = arith.cmpi slt, %29, %30 : vector<8x128xi32>
    %cst_20 = arith.constant 0.000000e+00 : f32
    %32 = vector.broadcast %cst_20 : f32 to vector<8x32xf32>
    %c0_i32_21 = arith.constant 0 : i32
    %c7_i32 = arith.constant 7 : i32
    %33 = arith.subi %c7_i32, %c0_i32_21 : i32
    %34 = arith.index_cast %c0_i32_21 : i32 to index
    %c0_22 = arith.constant 0 : index
    %c0_23 = arith.constant 0 : index
    %35 = vector.load %arg17[%34, %c0_22, %c0_23] : memref<8x8x128xf32, #tpu.memory_space<vmem>>, vector<1x8x128xf32>
    %36 = vector.shape_cast %35 : vector<1x8x128xf32> to vector<8x128xf32>
    %37 = arith.index_cast %33 : i32 to index
    %c0_24 = arith.constant 0 : index
    %c0_25 = arith.constant 0 : index
    %38 = vector.load %arg17[%37, %c0_24, %c0_25] : memref<8x8x128xf32, #tpu.memory_space<vmem>>, vector<1x8x128xf32>
    %39 = vector.shape_cast %38 : vector<1x8x128xf32> to vector<8x128xf32>
    %40 = arith.select %31, %36, %39 : vector<8x128xi1>, vector<8x128xf32>
    %cst_26 = arith.constant dense<0.000000e+00> : vector<8x128xf32>
    %41 = tpu.matmul %32, %9, %cst_26 {dimension_numbers = #tpu.dot_dimension_numbers<[1], [0], [0], [1], [0, 0, 1, 1], [], []>} : vector<8x32xf32>, vector<32x128xf32>, vector<8x128xf32> -> vector<8x128xf32>
    %42 = arith.addf %40, %41 : vector<8x128xf32>
    %43 = math.tanh %42 : vector<8x128xf32>
    %44 = vector.extract_strided_slice %43 {offsets = [0, 0], sizes = [8, 32], strides = [1, 1]} : vector<8x128xf32> to vector<8x32xf32>
    %cst_27 = arith.constant 5.000000e-01 : f32
    %45 = vector.broadcast %cst_27 : f32 to vector<8x32xf32>
    %46 = arith.mulf %45, %44 : vector<8x32xf32>
    %cst_28 = arith.constant 5.000000e-01 : f32
    %47 = vector.broadcast %cst_28 : f32 to vector<8x32xf32>
    %48 = arith.addf %46, %47 : vector<8x32xf32>
    %49 = vector.extract_strided_slice %43 {offsets = [0, 32], sizes = [8, 32], strides = [1, 1]} : vector<8x128xf32> to vector<8x32xf32>
    %cst_29 = arith.constant 5.000000e-01 : f32
    %50 = vector.broadcast %cst_29 : f32 to vector<8x32xf32>
    %51 = arith.mulf %50, %49 : vector<8x32xf32>
    %cst_30 = arith.constant 5.000000e-01 : f32
    %52 = vector.broadcast %cst_30 : f32 to vector<8x32xf32>
    %53 = arith.addf %51, %52 : vector<8x32xf32>
    %54 = vector.extract_strided_slice %43 {offsets = [0, 64], sizes = [8, 32], strides = [1, 1]} : vector<8x128xf32> to vector<8x32xf32>
    %cst_31 = arith.constant 5.000000e-01 : f32
    %55 = vector.broadcast %cst_31 : f32 to vector<8x32xf32>
    %56 = arith.mulf %55, %54 : vector<8x32xf32>
    %cst_32 = arith.constant 5.000000e-01 : f32
    %57 = vector.broadcast %cst_32 : f32 to vector<8x32xf32>
    %58 = arith.addf %56, %57 : vector<8x32xf32>
    %59 = vector.extract_strided_slice %43 {offsets = [0, 96], sizes = [8, 32], strides = [1, 1]} : vector<8x128xf32> to vector<8x32xf32>
    %60 = arith.mulf %53, %32 : vector<8x32xf32>
    %61 = arith.mulf %48, %59 : vector<8x32xf32>
    %62 = arith.addf %60, %61 : vector<8x32xf32>
    %63 = math.tanh %62 : vector<8x32xf32>
    %64 = arith.mulf %58, %63 : vector<8x32xf32>
    %65 = vector.extract_strided_slice %64 {offsets = [0, 0], sizes = [8, 16], strides = [1, 1]} : vector<8x32xf32> to vector<8x16xf32>
    %c1_i32_33 = arith.constant 1 : i32
    %66 = arith.addi %c1_i32_33, %c0_i32_21 : i32
    %67 = arith.index_cast %66 : i32 to index
    %c0_34 = arith.constant 0 : index
    %c0_35 = arith.constant 0 : index
    %68 = vector.load %arg18[%67, %c0_34, %c0_35] : memref<10x8x32xf32, #tpu.memory_space<vmem>>, vector<1x8x16xf32>
    %69 = vector.shape_cast %68 : vector<1x8x16xf32> to vector<8x16xf32>
    %70 = vector.shape_cast %65 : vector<8x16xf32> to vector<1x8x16xf32>
    tpu.vector_store %arg18[%67, %c0_34, %c0_35], %70 {strides = array<i32>} : memref<10x8x32xf32, #tpu.memory_space<vmem>>, vector<1x8x16xf32>,
    %71 = vector.extract_strided_slice %64 {offsets = [0, 16], sizes = [8, 16], strides = [1, 1]} : vector<8x32xf32> to vector<8x16xf32>
    %c1_i32_36 = arith.constant 1 : i32
    %72 = arith.addi %c1_i32_36, %33 : i32
    %73 = arith.index_cast %72 : i32 to index
    %c0_37 = arith.constant 0 : index
    %c16 = arith.constant 16 : index
    %74 = vector.load %arg18[%73, %c0_37, %c16] : memref<10x8x32xf32, #tpu.memory_space<vmem>>, vector<1x8x16xf32>
    %75 = vector.shape_cast %74 : vector<1x8x16xf32> to vector<8x16xf32>
    %76 = vector.shape_cast %71 : vector<8x16xf32> to vector<1x8x16xf32>
    tpu.vector_store %arg18[%73, %c0_37, %c16], %76 {strides = array<i32>} : memref<10x8x32xf32, #tpu.memory_space<vmem>>, vector<1x8x16xf32>,
    %c1_i32_38 = arith.constant 1 : i32
    %c7_i32_39 = arith.constant 7 : i32
    %77 = arith.subi %c7_i32_39, %c1_i32_38 : i32
    %78 = arith.index_cast %c1_i32_38 : i32 to index
    %c0_40 = arith.constant 0 : index
    %c0_41 = arith.constant 0 : index
    %79 = vector.load %arg17[%78, %c0_40, %c0_41] : memref<8x8x128xf32, #tpu.memory_space<vmem>>, vector<1x8x128xf32>
    %80 = vector.shape_cast %79 : vector<1x8x128xf32> to vector<8x128xf32>
    %81 = arith.index_cast %77 : i32 to index
    %c0_42 = arith.constant 0 : index
    %c0_43 = arith.constant 0 : index
    %82 = vector.load %arg17[%81, %c0_42, %c0_43] : memref<8x8x128xf32, #tpu.memory_space<vmem>>, vector<1x8x128xf32>
    %83 = vector.shape_cast %82 : vector<1x8x128xf32> to vector<8x128xf32>
    %84 = arith.select %31, %80, %83 : vector<8x128xi1>, vector<8x128xf32>
    %cst_44 = arith.constant dense<0.000000e+00> : vector<8x128xf32>
    %85 = tpu.matmul %64, %9, %cst_44 {dimension_numbers = #tpu.dot_dimension_numbers<[1], [0], [0], [1], [0, 0, 1, 1], [], []>} : vector<8x32xf32>, vector<32x128xf32>, vector<8x128xf32> -> vector<8x128xf32>
    %86 = arith.addf %84, %85 : vector<8x128xf32>
    %87 = math.tanh %86 : vector<8x128xf32>
    %88 = vector.extract_strided_slice %87 {offsets = [0, 0], sizes = [8, 32], strides = [1, 1]} : vector<8x128xf32> to vector<8x32xf32>
    %cst_45 = arith.constant 5.000000e-01 : f32
    %89 = vector.broadcast %cst_45 : f32 to vector<8x32xf32>
    %90 = arith.mulf %89, %88 : vector<8x32xf32>
    %cst_46 = arith.constant 5.000000e-01 : f32
    %91 = vector.broadcast %cst_46 : f32 to vector<8x32xf32>
    %92 = arith.addf %90, %91 : vector<8x32xf32>
    %93 = vector.extract_strided_slice %87 {offsets = [0, 32], sizes = [8, 32], strides = [1, 1]} : vector<8x128xf32> to vector<8x32xf32>
    %cst_47 = arith.constant 5.000000e-01 : f32
    %94 = vector.broadcast %cst_47 : f32 to vector<8x32xf32>
    %95 = arith.mulf %94, %93 : vector<8x32xf32>
    %cst_48 = arith.constant 5.000000e-01 : f32
    %96 = vector.broadcast %cst_48 : f32 to vector<8x32xf32>
    %97 = arith.addf %95, %96 : vector<8x32xf32>
    %98 = vector.extract_strided_slice %87 {offsets = [0, 64], sizes = [8, 32], strides = [1, 1]} : vector<8x128xf32> to vector<8x32xf32>
    %cst_49 = arith.constant 5.000000e-01 : f32
    %99 = vector.broadcast %cst_49 : f32 to vector<8x32xf32>
    %100 = arith.mulf %99, %98 : vector<8x32xf32>
    %cst_50 = arith.constant 5.000000e-01 : f32
    %101 = vector.broadcast %cst_50 : f32 to vector<8x32xf32>
    %102 = arith.addf %100, %101 : vector<8x32xf32>
    %103 = vector.extract_strided_slice %87 {offsets = [0, 96], sizes = [8, 32], strides = [1, 1]} : vector<8x128xf32> to vector<8x32xf32>
    %104 = arith.mulf %97, %62 : vector<8x32xf32>
    %105 = arith.mulf %92, %103 : vector<8x32xf32>
    %106 = arith.addf %104, %105 : vector<8x32xf32>
    %107 = math.tanh %106 : vector<8x32xf32>
    %108 = arith.mulf %102, %107 : vector<8x32xf32>
    %109 = vector.extract_strided_slice %108 {offsets = [0, 0], sizes = [8, 16], strides = [1, 1]} : vector<8x32xf32> to vector<8x16xf32>
    %c1_i32_51 = arith.constant 1 : i32
    %110 = arith.addi %c1_i32_51, %c1_i32_38 : i32
    %111 = arith.index_cast %110 : i32 to index
    %c0_52 = arith.constant 0 : index
    %c0_53 = arith.constant 0 : index
    %112 = vector.load %arg18[%111, %c0_52, %c0_53] : memref<10x8x32xf32, #tpu.memory_space<vmem>>, vector<1x8x16xf32>
    %113 = vector.shape_cast %112 : vector<1x8x16xf32> to vector<8x16xf32>
    %114 = vector.shape_cast %109 : vector<8x16xf32> to vector<1x8x16xf32>
    tpu.vector_store %arg18[%111, %c0_52, %c0_53], %114 {strides = array<i32>} : memref<10x8x32xf32, #tpu.memory_space<vmem>>, vector<1x8x16xf32>,
    %115 = vector.extract_strided_slice %108 {offsets = [0, 16], sizes = [8, 16], strides = [1, 1]} : vector<8x32xf32> to vector<8x16xf32>
    %c1_i32_54 = arith.constant 1 : i32
    %116 = arith.addi %c1_i32_54, %77 : i32
    %117 = arith.index_cast %116 : i32 to index
    %c0_55 = arith.constant 0 : index
    %c16_56 = arith.constant 16 : index
    %118 = vector.load %arg18[%117, %c0_55, %c16_56] : memref<10x8x32xf32, #tpu.memory_space<vmem>>, vector<1x8x16xf32>
    %119 = vector.shape_cast %118 : vector<1x8x16xf32> to vector<8x16xf32>
    %120 = vector.shape_cast %115 : vector<8x16xf32> to vector<1x8x16xf32>
    tpu.vector_store %arg18[%117, %c0_55, %c16_56], %120 {strides = array<i32>} : memref<10x8x32xf32, #tpu.memory_space<vmem>>, vector<1x8x16xf32>,
    %c2_i32 = arith.constant 2 : i32
    %c7_i32_57 = arith.constant 7 : i32
    %121 = arith.subi %c7_i32_57, %c2_i32 : i32
    %122 = arith.index_cast %c2_i32 : i32 to index
    %c0_58 = arith.constant 0 : index
    %c0_59 = arith.constant 0 : index
    %123 = vector.load %arg17[%122, %c0_58, %c0_59] : memref<8x8x128xf32, #tpu.memory_space<vmem>>, vector<1x8x128xf32>
    %124 = vector.shape_cast %123 : vector<1x8x128xf32> to vector<8x128xf32>
    %125 = arith.index_cast %121 : i32 to index
    %c0_60 = arith.constant 0 : index
    %c0_61 = arith.constant 0 : index
    %126 = vector.load %arg17[%125, %c0_60, %c0_61] : memref<8x8x128xf32, #tpu.memory_space<vmem>>, vector<1x8x128xf32>
    %127 = vector.shape_cast %126 : vector<1x8x128xf32> to vector<8x128xf32>
    %128 = arith.select %31, %124, %127 : vector<8x128xi1>, vector<8x128xf32>
    %cst_62 = arith.constant dense<0.000000e+00> : vector<8x128xf32>
    %129 = tpu.matmul %108, %9, %cst_62 {dimension_numbers = #tpu.dot_dimension_numbers<[1], [0], [0], [1], [0, 0, 1, 1], [], []>} : vector<8x32xf32>, vector<32x128xf32>, vector<8x128xf32> -> vector<8x128xf32>
    %130 = arith.addf %128, %129 : vector<8x128xf32>
    %131 = math.tanh %130 : vector<8x128xf32>
    %132 = vector.extract_strided_slice %131 {offsets = [0, 0], sizes = [8, 32], strides = [1, 1]} : vector<8x128xf32> to vector<8x32xf32>
    %cst_63 = arith.constant 5.000000e-01 : f32
    %133 = vector.broadcast %cst_63 : f32 to vector<8x32xf32>
    %134 = arith.mulf %133, %132 : vector<8x32xf32>
    %cst_64 = arith.constant 5.000000e-01 : f32
    %135 = vector.broadcast %cst_64 : f32 to vector<8x32xf32>
    %136 = arith.addf %134, %135 : vector<8x32xf32>
    %137 = vector.extract_strided_slice %131 {offsets = [0, 32], sizes = [8, 32], strides = [1, 1]} : vector<8x128xf32> to vector<8x32xf32>
    %cst_65 = arith.constant 5.000000e-01 : f32
    %138 = vector.broadcast %cst_65 : f32 to vector<8x32xf32>
    %139 = arith.mulf %138, %137 : vector<8x32xf32>
    %cst_66 = arith.constant 5.000000e-01 : f32
    %140 = vector.broadcast %cst_66 : f32 to vector<8x32xf32>
    %141 = arith.addf %139, %140 : vector<8x32xf32>
    %142 = vector.extract_strided_slice %131 {offsets = [0, 64], sizes = [8, 32], strides = [1, 1]} : vector<8x128xf32> to vector<8x32xf32>
    %cst_67 = arith.constant 5.000000e-01 : f32
    %143 = vector.broadcast %cst_67 : f32 to vector<8x32xf32>
    %144 = arith.mulf %143, %142 : vector<8x32xf32>
    %cst_68 = arith.constant 5.000000e-01 : f32
    %145 = vector.broadcast %cst_68 : f32 to vector<8x32xf32>
    %146 = arith.addf %144, %145 : vector<8x32xf32>
    %147 = vector.extract_strided_slice %131 {offsets = [0, 96], sizes = [8, 32], strides = [1, 1]} : vector<8x128xf32> to vector<8x32xf32>
    %148 = arith.mulf %141, %106 : vector<8x32xf32>
    %149 = arith.mulf %136, %147 : vector<8x32xf32>
    %150 = arith.addf %148, %149 : vector<8x32xf32>
    %151 = math.tanh %150 : vector<8x32xf32>
    %152 = arith.mulf %146, %151 : vector<8x32xf32>
    %153 = vector.extract_strided_slice %152 {offsets = [0, 0], sizes = [8, 16], strides = [1, 1]} : vector<8x32xf32> to vector<8x16xf32>
    %c1_i32_69 = arith.constant 1 : i32
    %154 = arith.addi %c1_i32_69, %c2_i32 : i32
    %155 = arith.index_cast %154 : i32 to index
    %c0_70 = arith.constant 0 : index
    %c0_71 = arith.constant 0 : index
    %156 = vector.load %arg18[%155, %c0_70, %c0_71] : memref<10x8x32xf32, #tpu.memory_space<vmem>>, vector<1x8x16xf32>
    %157 = vector.shape_cast %156 : vector<1x8x16xf32> to vector<8x16xf32>
    %158 = vector.shape_cast %153 : vector<8x16xf32> to vector<1x8x16xf32>
    tpu.vector_store %arg18[%155, %c0_70, %c0_71], %158 {strides = array<i32>} : memref<10x8x32xf32, #tpu.memory_space<vmem>>, vector<1x8x16xf32>,
    %159 = vector.extract_strided_slice %152 {offsets = [0, 16], sizes = [8, 16], strides = [1, 1]} : vector<8x32xf32> to vector<8x16xf32>
    %c1_i32_72 = arith.constant 1 : i32
    %160 = arith.addi %c1_i32_72, %121 : i32
    %161 = arith.index_cast %160 : i32 to index
    %c0_73 = arith.constant 0 : index
    %c16_74 = arith.constant 16 : index
    %162 = vector.load %arg18[%161, %c0_73, %c16_74] : memref<10x8x32xf32, #tpu.memory_space<vmem>>, vector<1x8x16xf32>
    %163 = vector.shape_cast %162 : vector<1x8x16xf32> to vector<8x16xf32>
    %164 = vector.shape_cast %159 : vector<8x16xf32> to vector<1x8x16xf32>
    tpu.vector_store %arg18[%161, %c0_73, %c16_74], %164 {strides = array<i32>} : memref<10x8x32xf32, #tpu.memory_space<vmem>>, vector<1x8x16xf32>,
    %c3_i32 = arith.constant 3 : i32
    %c7_i32_75 = arith.constant 7 : i32
    %165 = arith.subi %c7_i32_75, %c3_i32 : i32
    %166 = arith.index_cast %c3_i32 : i32 to index
    %c0_76 = arith.constant 0 : index
    %c0_77 = arith.constant 0 : index
    %167 = vector.load %arg17[%166, %c0_76, %c0_77] : memref<8x8x128xf32, #tpu.memory_space<vmem>>, vector<1x8x128xf32>
    %168 = vector.shape_cast %167 : vector<1x8x128xf32> to vector<8x128xf32>
    %169 = arith.index_cast %165 : i32 to index
    %c0_78 = arith.constant 0 : index
    %c0_79 = arith.constant 0 : index
    %170 = vector.load %arg17[%169, %c0_78, %c0_79] : memref<8x8x128xf32, #tpu.memory_space<vmem>>, vector<1x8x128xf32>
    %171 = vector.shape_cast %170 : vector<1x8x128xf32> to vector<8x128xf32>
    %172 = arith.select %31, %168, %171 : vector<8x128xi1>, vector<8x128xf32>
    %cst_80 = arith.constant dense<0.000000e+00> : vector<8x128xf32>
    %173 = tpu.matmul %152, %9, %cst_80 {dimension_numbers = #tpu.dot_dimension_numbers<[1], [0], [0], [1], [0, 0, 1, 1], [], []>} : vector<8x32xf32>, vector<32x128xf32>, vector<8x128xf32> -> vector<8x128xf32>
    %174 = arith.addf %172, %173 : vector<8x128xf32>
    %175 = math.tanh %174 : vector<8x128xf32>
    %176 = vector.extract_strided_slice %175 {offsets = [0, 0], sizes = [8, 32], strides = [1, 1]} : vector<8x128xf32> to vector<8x32xf32>
    %cst_81 = arith.constant 5.000000e-01 : f32
    %177 = vector.broadcast %cst_81 : f32 to vector<8x32xf32>
    %178 = arith.mulf %177, %176 : vector<8x32xf32>
    %cst_82 = arith.constant 5.000000e-01 : f32
    %179 = vector.broadcast %cst_82 : f32 to vector<8x32xf32>
    %180 = arith.addf %178, %179 : vector<8x32xf32>
    %181 = vector.extract_strided_slice %175 {offsets = [0, 32], sizes = [8, 32], strides = [1, 1]} : vector<8x128xf32> to vector<8x32xf32>
    %cst_83 = arith.constant 5.000000e-01 : f32
    %182 = vector.broadcast %cst_83 : f32 to vector<8x32xf32>
    %183 = arith.mulf %182, %181 : vector<8x32xf32>
    %cst_84 = arith.constant 5.000000e-01 : f32
    %184 = vector.broadcast %cst_84 : f32 to vector<8x32xf32>
    %185 = arith.addf %183, %184 : vector<8x32xf32>
    %186 = vector.extract_strided_slice %175 {offsets = [0, 64], sizes = [8, 32], strides = [1, 1]} : vector<8x128xf32> to vector<8x32xf32>
    %cst_85 = arith.constant 5.000000e-01 : f32
    %187 = vector.broadcast %cst_85 : f32 to vector<8x32xf32>
    %188 = arith.mulf %187, %186 : vector<8x32xf32>
    %cst_86 = arith.constant 5.000000e-01 : f32
    %189 = vector.broadcast %cst_86 : f32 to vector<8x32xf32>
    %190 = arith.addf %188, %189 : vector<8x32xf32>
    %191 = vector.extract_strided_slice %175 {offsets = [0, 96], sizes = [8, 32], strides = [1, 1]} : vector<8x128xf32> to vector<8x32xf32>
    %192 = arith.mulf %185, %150 : vector<8x32xf32>
    %193 = arith.mulf %180, %191 : vector<8x32xf32>
    %194 = arith.addf %192, %193 : vector<8x32xf32>
    %195 = math.tanh %194 : vector<8x32xf32>
    %196 = arith.mulf %190, %195 : vector<8x32xf32>
    %197 = vector.extract_strided_slice %196 {offsets = [0, 0], sizes = [8, 16], strides = [1, 1]} : vector<8x32xf32> to vector<8x16xf32>
    %c1_i32_87 = arith.constant 1 : i32
    %198 = arith.addi %c1_i32_87, %c3_i32 : i32
    %199 = arith.index_cast %198 : i32 to index
    %c0_88 = arith.constant 0 : index
    %c0_89 = arith.constant 0 : index
    %200 = vector.load %arg18[%199, %c0_88, %c0_89] : memref<10x8x32xf32, #tpu.memory_space<vmem>>, vector<1x8x16xf32>
    %201 = vector.shape_cast %200 : vector<1x8x16xf32> to vector<8x16xf32>
    %202 = vector.shape_cast %197 : vector<8x16xf32> to vector<1x8x16xf32>
    tpu.vector_store %arg18[%199, %c0_88, %c0_89], %202 {strides = array<i32>} : memref<10x8x32xf32, #tpu.memory_space<vmem>>, vector<1x8x16xf32>,
    %203 = vector.extract_strided_slice %196 {offsets = [0, 16], sizes = [8, 16], strides = [1, 1]} : vector<8x32xf32> to vector<8x16xf32>
    %c1_i32_90 = arith.constant 1 : i32
    %204 = arith.addi %c1_i32_90, %165 : i32
    %205 = arith.index_cast %204 : i32 to index
    %c0_91 = arith.constant 0 : index
    %c16_92 = arith.constant 16 : index
    %206 = vector.load %arg18[%205, %c0_91, %c16_92] : memref<10x8x32xf32, #tpu.memory_space<vmem>>, vector<1x8x16xf32>
    %207 = vector.shape_cast %206 : vector<1x8x16xf32> to vector<8x16xf32>
    %208 = vector.shape_cast %203 : vector<8x16xf32> to vector<1x8x16xf32>
    tpu.vector_store %arg18[%205, %c0_91, %c16_92], %208 {strides = array<i32>} : memref<10x8x32xf32, #tpu.memory_space<vmem>>, vector<1x8x16xf32>,
    %c4_i32 = arith.constant 4 : i32
    %c7_i32_93 = arith.constant 7 : i32
    %209 = arith.subi %c7_i32_93, %c4_i32 : i32
    %210 = arith.index_cast %c4_i32 : i32 to index
    %c0_94 = arith.constant 0 : index
    %c0_95 = arith.constant 0 : index
    %211 = vector.load %arg17[%210, %c0_94, %c0_95] : memref<8x8x128xf32, #tpu.memory_space<vmem>>, vector<1x8x128xf32>
    %212 = vector.shape_cast %211 : vector<1x8x128xf32> to vector<8x128xf32>
    %213 = arith.index_cast %209 : i32 to index
    %c0_96 = arith.constant 0 : index
    %c0_97 = arith.constant 0 : index
    %214 = vector.load %arg17[%213, %c0_96, %c0_97] : memref<8x8x128xf32, #tpu.memory_space<vmem>>, vector<1x8x128xf32>
    %215 = vector.shape_cast %214 : vector<1x8x128xf32> to vector<8x128xf32>
    %216 = arith.select %31, %212, %215 : vector<8x128xi1>, vector<8x128xf32>
    %cst_98 = arith.constant dense<0.000000e+00> : vector<8x128xf32>
    %217 = tpu.matmul %196, %9, %cst_98 {dimension_numbers = #tpu.dot_dimension_numbers<[1], [0], [0], [1], [0, 0, 1, 1], [], []>} : vector<8x32xf32>, vector<32x128xf32>, vector<8x128xf32> -> vector<8x128xf32>
    %218 = arith.addf %216, %217 : vector<8x128xf32>
    %219 = math.tanh %218 : vector<8x128xf32>
    %220 = vector.extract_strided_slice %219 {offsets = [0, 0], sizes = [8, 32], strides = [1, 1]} : vector<8x128xf32> to vector<8x32xf32>
    %cst_99 = arith.constant 5.000000e-01 : f32
    %221 = vector.broadcast %cst_99 : f32 to vector<8x32xf32>
    %222 = arith.mulf %221, %220 : vector<8x32xf32>
    %cst_100 = arith.constant 5.000000e-01 : f32
    %223 = vector.broadcast %cst_100 : f32 to vector<8x32xf32>
    %224 = arith.addf %222, %223 : vector<8x32xf32>
    %225 = vector.extract_strided_slice %219 {offsets = [0, 32], sizes = [8, 32], strides = [1, 1]} : vector<8x128xf32> to vector<8x32xf32>
    %cst_101 = arith.constant 5.000000e-01 : f32
    %226 = vector.broadcast %cst_101 : f32 to vector<8x32xf32>
    %227 = arith.mulf %226, %225 : vector<8x32xf32>
    %cst_102 = arith.constant 5.000000e-01 : f32
    %228 = vector.broadcast %cst_102 : f32 to vector<8x32xf32>
    %229 = arith.addf %227, %228 : vector<8x32xf32>
    %230 = vector.extract_strided_slice %219 {offsets = [0, 64], sizes = [8, 32], strides = [1, 1]} : vector<8x128xf32> to vector<8x32xf32>
    %cst_103 = arith.constant 5.000000e-01 : f32
    %231 = vector.broadcast %cst_103 : f32 to vector<8x32xf32>
    %232 = arith.mulf %231, %230 : vector<8x32xf32>
    %cst_104 = arith.constant 5.000000e-01 : f32
    %233 = vector.broadcast %cst_104 : f32 to vector<8x32xf32>
    %234 = arith.addf %232, %233 : vector<8x32xf32>
    %235 = vector.extract_strided_slice %219 {offsets = [0, 96], sizes = [8, 32], strides = [1, 1]} : vector<8x128xf32> to vector<8x32xf32>
    %236 = arith.mulf %229, %194 : vector<8x32xf32>
    %237 = arith.mulf %224, %235 : vector<8x32xf32>
    %238 = arith.addf %236, %237 : vector<8x32xf32>
    %239 = math.tanh %238 : vector<8x32xf32>
    %240 = arith.mulf %234, %239 : vector<8x32xf32>
    %241 = vector.extract_strided_slice %240 {offsets = [0, 0], sizes = [8, 16], strides = [1, 1]} : vector<8x32xf32> to vector<8x16xf32>
    %c1_i32_105 = arith.constant 1 : i32
    %242 = arith.addi %c1_i32_105, %c4_i32 : i32
    %243 = arith.index_cast %242 : i32 to index
    %c0_106 = arith.constant 0 : index
    %c0_107 = arith.constant 0 : index
    %244 = vector.load %arg18[%243, %c0_106, %c0_107] : memref<10x8x32xf32, #tpu.memory_space<vmem>>, vector<1x8x16xf32>
    %245 = vector.shape_cast %244 : vector<1x8x16xf32> to vector<8x16xf32>
    %246 = vector.shape_cast %241 : vector<8x16xf32> to vector<1x8x16xf32>
    tpu.vector_store %arg18[%243, %c0_106, %c0_107], %246 {strides = array<i32>} : memref<10x8x32xf32, #tpu.memory_space<vmem>>, vector<1x8x16xf32>,
    %247 = vector.extract_strided_slice %240 {offsets = [0, 16], sizes = [8, 16], strides = [1, 1]} : vector<8x32xf32> to vector<8x16xf32>
    %c1_i32_108 = arith.constant 1 : i32
    %248 = arith.addi %c1_i32_108, %209 : i32
    %249 = arith.index_cast %248 : i32 to index
    %c0_109 = arith.constant 0 : index
    %c16_110 = arith.constant 16 : index
    %250 = vector.load %arg18[%249, %c0_109, %c16_110] : memref<10x8x32xf32, #tpu.memory_space<vmem>>, vector<1x8x16xf32>
    %251 = vector.shape_cast %250 : vector<1x8x16xf32> to vector<8x16xf32>
    %252 = vector.shape_cast %247 : vector<8x16xf32> to vector<1x8x16xf32>
    tpu.vector_store %arg18[%249, %c0_109, %c16_110], %252 {strides = array<i32>} : memref<10x8x32xf32, #tpu.memory_space<vmem>>, vector<1x8x16xf32>,
    %c5_i32 = arith.constant 5 : i32
    %c7_i32_111 = arith.constant 7 : i32
    %253 = arith.subi %c7_i32_111, %c5_i32 : i32
    %254 = arith.index_cast %c5_i32 : i32 to index
    %c0_112 = arith.constant 0 : index
    %c0_113 = arith.constant 0 : index
    %255 = vector.load %arg17[%254, %c0_112, %c0_113] : memref<8x8x128xf32, #tpu.memory_space<vmem>>, vector<1x8x128xf32>
    %256 = vector.shape_cast %255 : vector<1x8x128xf32> to vector<8x128xf32>
    %257 = arith.index_cast %253 : i32 to index
    %c0_114 = arith.constant 0 : index
    %c0_115 = arith.constant 0 : index
    %258 = vector.load %arg17[%257, %c0_114, %c0_115] : memref<8x8x128xf32, #tpu.memory_space<vmem>>, vector<1x8x128xf32>
    %259 = vector.shape_cast %258 : vector<1x8x128xf32> to vector<8x128xf32>
    %260 = arith.select %31, %256, %259 : vector<8x128xi1>, vector<8x128xf32>
    %cst_116 = arith.constant dense<0.000000e+00> : vector<8x128xf32>
    %261 = tpu.matmul %240, %9, %cst_116 {dimension_numbers = #tpu.dot_dimension_numbers<[1], [0], [0], [1], [0, 0, 1, 1], [], []>} : vector<8x32xf32>, vector<32x128xf32>, vector<8x128xf32> -> vector<8x128xf32>
    %262 = arith.addf %260, %261 : vector<8x128xf32>
    %263 = math.tanh %262 : vector<8x128xf32>
    %264 = vector.extract_strided_slice %263 {offsets = [0, 0], sizes = [8, 32], strides = [1, 1]} : vector<8x128xf32> to vector<8x32xf32>
    %cst_117 = arith.constant 5.000000e-01 : f32
    %265 = vector.broadcast %cst_117 : f32 to vector<8x32xf32>
    %266 = arith.mulf %265, %264 : vector<8x32xf32>
    %cst_118 = arith.constant 5.000000e-01 : f32
    %267 = vector.broadcast %cst_118 : f32 to vector<8x32xf32>
    %268 = arith.addf %266, %267 : vector<8x32xf32>
    %269 = vector.extract_strided_slice %263 {offsets = [0, 32], sizes = [8, 32], strides = [1, 1]} : vector<8x128xf32> to vector<8x32xf32>
    %cst_119 = arith.constant 5.000000e-01 : f32
    %270 = vector.broadcast %cst_119 : f32 to vector<8x32xf32>
    %271 = arith.mulf %270, %269 : vector<8x32xf32>
    %cst_120 = arith.constant 5.000000e-01 : f32
    %272 = vector.broadcast %cst_120 : f32 to vector<8x32xf32>
    %273 = arith.addf %271, %272 : vector<8x32xf32>
    %274 = vector.extract_strided_slice %263 {offsets = [0, 64], sizes = [8, 32], strides = [1, 1]} : vector<8x128xf32> to vector<8x32xf32>
    %cst_121 = arith.constant 5.000000e-01 : f32
    %275 = vector.broadcast %cst_121 : f32 to vector<8x32xf32>
    %276 = arith.mulf %275, %274 : vector<8x32xf32>
    %cst_122 = arith.constant 5.000000e-01 : f32
    %277 = vector.broadcast %cst_122 : f32 to vector<8x32xf32>
    %278 = arith.addf %276, %277 : vector<8x32xf32>
    %279 = vector.extract_strided_slice %263 {offsets = [0, 96], sizes = [8, 32], strides = [1, 1]} : vector<8x128xf32> to vector<8x32xf32>
    %280 = arith.mulf %273, %238 : vector<8x32xf32>
    %281 = arith.mulf %268, %279 : vector<8x32xf32>
    %282 = arith.addf %280, %281 : vector<8x32xf32>
    %283 = math.tanh %282 : vector<8x32xf32>
    %284 = arith.mulf %278, %283 : vector<8x32xf32>
    %285 = vector.extract_strided_slice %284 {offsets = [0, 0], sizes = [8, 16], strides = [1, 1]} : vector<8x32xf32> to vector<8x16xf32>
    %c1_i32_123 = arith.constant 1 : i32
    %286 = arith.addi %c1_i32_123, %c5_i32 : i32
    %287 = arith.index_cast %286 : i32 to index
    %c0_124 = arith.constant 0 : index
    %c0_125 = arith.constant 0 : index
    %288 = vector.load %arg18[%287, %c0_124, %c0_125] : memref<10x8x32xf32, #tpu.memory_space<vmem>>, vector<1x8x16xf32>
    %289 = vector.shape_cast %288 : vector<1x8x16xf32> to vector<8x16xf32>
    %290 = vector.shape_cast %285 : vector<8x16xf32> to vector<1x8x16xf32>
    tpu.vector_store %arg18[%287, %c0_124, %c0_125], %290 {strides = array<i32>} : memref<10x8x32xf32, #tpu.memory_space<vmem>>, vector<1x8x16xf32>,
    %291 = vector.extract_strided_slice %284 {offsets = [0, 16], sizes = [8, 16], strides = [1, 1]} : vector<8x32xf32> to vector<8x16xf32>
    %c1_i32_126 = arith.constant 1 : i32
    %292 = arith.addi %c1_i32_126, %253 : i32
    %293 = arith.index_cast %292 : i32 to index
    %c0_127 = arith.constant 0 : index
    %c16_128 = arith.constant 16 : index
    %294 = vector.load %arg18[%293, %c0_127, %c16_128] : memref<10x8x32xf32, #tpu.memory_space<vmem>>, vector<1x8x16xf32>
    %295 = vector.shape_cast %294 : vector<1x8x16xf32> to vector<8x16xf32>
    %296 = vector.shape_cast %291 : vector<8x16xf32> to vector<1x8x16xf32>
    tpu.vector_store %arg18[%293, %c0_127, %c16_128], %296 {strides = array<i32>} : memref<10x8x32xf32, #tpu.memory_space<vmem>>, vector<1x8x16xf32>,
    %c6_i32 = arith.constant 6 : i32
    %c7_i32_129 = arith.constant 7 : i32
    %297 = arith.subi %c7_i32_129, %c6_i32 : i32
    %298 = arith.index_cast %c6_i32 : i32 to index
    %c0_130 = arith.constant 0 : index
    %c0_131 = arith.constant 0 : index
    %299 = vector.load %arg17[%298, %c0_130, %c0_131] : memref<8x8x128xf32, #tpu.memory_space<vmem>>, vector<1x8x128xf32>
    %300 = vector.shape_cast %299 : vector<1x8x128xf32> to vector<8x128xf32>
    %301 = arith.index_cast %297 : i32 to index
    %c0_132 = arith.constant 0 : index
    %c0_133 = arith.constant 0 : index
    %302 = vector.load %arg17[%301, %c0_132, %c0_133] : memref<8x8x128xf32, #tpu.memory_space<vmem>>, vector<1x8x128xf32>
    %303 = vector.shape_cast %302 : vector<1x8x128xf32> to vector<8x128xf32>
    %304 = arith.select %31, %300, %303 : vector<8x128xi1>, vector<8x128xf32>
    %cst_134 = arith.constant dense<0.000000e+00> : vector<8x128xf32>
    %305 = tpu.matmul %284, %9, %cst_134 {dimension_numbers = #tpu.dot_dimension_numbers<[1], [0], [0], [1], [0, 0, 1, 1], [], []>} : vector<8x32xf32>, vector<32x128xf32>, vector<8x128xf32> -> vector<8x128xf32>
    %306 = arith.addf %304, %305 : vector<8x128xf32>
    %307 = math.tanh %306 : vector<8x128xf32>
    %308 = vector.extract_strided_slice %307 {offsets = [0, 0], sizes = [8, 32], strides = [1, 1]} : vector<8x128xf32> to vector<8x32xf32>
    %cst_135 = arith.constant 5.000000e-01 : f32
    %309 = vector.broadcast %cst_135 : f32 to vector<8x32xf32>
    %310 = arith.mulf %309, %308 : vector<8x32xf32>
    %cst_136 = arith.constant 5.000000e-01 : f32
    %311 = vector.broadcast %cst_136 : f32 to vector<8x32xf32>
    %312 = arith.addf %310, %311 : vector<8x32xf32>
    %313 = vector.extract_strided_slice %307 {offsets = [0, 32], sizes = [8, 32], strides = [1, 1]} : vector<8x128xf32> to vector<8x32xf32>
    %cst_137 = arith.constant 5.000000e-01 : f32
    %314 = vector.broadcast %cst_137 : f32 to vector<8x32xf32>
    %315 = arith.mulf %314, %313 : vector<8x32xf32>
    %cst_138 = arith.constant 5.000000e-01 : f32
    %316 = vector.broadcast %cst_138 : f32 to vector<8x32xf32>
    %317 = arith.addf %315, %316 : vector<8x32xf32>
    %318 = vector.extract_strided_slice %307 {offsets = [0, 64], sizes = [8, 32], strides = [1, 1]} : vector<8x128xf32> to vector<8x32xf32>
    %cst_139 = arith.constant 5.000000e-01 : f32
    %319 = vector.broadcast %cst_139 : f32 to vector<8x32xf32>
    %320 = arith.mulf %319, %318 : vector<8x32xf32>
    %cst_140 = arith.constant 5.000000e-01 : f32
    %321 = vector.broadcast %cst_140 : f32 to vector<8x32xf32>
    %322 = arith.addf %320, %321 : vector<8x32xf32>
    %323 = vector.extract_strided_slice %307 {offsets = [0, 96], sizes = [8, 32], strides = [1, 1]} : vector<8x128xf32> to vector<8x32xf32>
    %324 = arith.mulf %317, %282 : vector<8x32xf32>
    %325 = arith.mulf %312, %323 : vector<8x32xf32>
    %326 = arith.addf %324, %325 : vector<8x32xf32>
    %327 = math.tanh %326 : vector<8x32xf32>
    %328 = arith.mulf %322, %327 : vector<8x32xf32>
    %329 = vector.extract_strided_slice %328 {offsets = [0, 0], sizes = [8, 16], strides = [1, 1]} : vector<8x32xf32> to vector<8x16xf32>
    %c1_i32_141 = arith.constant 1 : i32
    %330 = arith.addi %c1_i32_141, %c6_i32 : i32
    %331 = arith.index_cast %330 : i32 to index
    %c0_142 = arith.constant 0 : index
    %c0_143 = arith.constant 0 : index
    %332 = vector.load %arg18[%331, %c0_142, %c0_143] : memref<10x8x32xf32, #tpu.memory_space<vmem>>, vector<1x8x16xf32>
    %333 = vector.shape_cast %332 : vector<1x8x16xf32> to vector<8x16xf32>
    %334 = vector.shape_cast %329 : vector<8x16xf32> to vector<1x8x16xf32>
    tpu.vector_store %arg18[%331, %c0_142, %c0_143], %334 {strides = array<i32>} : memref<10x8x32xf32, #tpu.memory_space<vmem>>, vector<1x8x16xf32>,
    %335 = vector.extract_strided_slice %328 {offsets = [0, 16], sizes = [8, 16], strides = [1, 1]} : vector<8x32xf32> to vector<8x16xf32>
    %c1_i32_144 = arith.constant 1 : i32
    %336 = arith.addi %c1_i32_144, %297 : i32
    %337 = arith.index_cast %336 : i32 to index
    %c0_145 = arith.constant 0 : index
    %c16_146 = arith.constant 16 : index
    %338 = vector.load %arg18[%337, %c0_145, %c16_146] : memref<10x8x32xf32, #tpu.memory_space<vmem>>, vector<1x8x16xf32>
    %339 = vector.shape_cast %338 : vector<1x8x16xf32> to vector<8x16xf32>
    %340 = vector.shape_cast %335 : vector<8x16xf32> to vector<1x8x16xf32>
    tpu.vector_store %arg18[%337, %c0_145, %c16_146], %340 {strides = array<i32>} : memref<10x8x32xf32, #tpu.memory_space<vmem>>, vector<1x8x16xf32>,
    %c7_i32_147 = arith.constant 7 : i32
    %c7_i32_148 = arith.constant 7 : i32
    %341 = arith.subi %c7_i32_148, %c7_i32_147 : i32
    %342 = arith.index_cast %c7_i32_147 : i32 to index
    %c0_149 = arith.constant 0 : index
    %c0_150 = arith.constant 0 : index
    %343 = vector.load %arg17[%342, %c0_149, %c0_150] : memref<8x8x128xf32, #tpu.memory_space<vmem>>, vector<1x8x128xf32>
    %344 = vector.shape_cast %343 : vector<1x8x128xf32> to vector<8x128xf32>
    %345 = arith.index_cast %341 : i32 to index
    %c0_151 = arith.constant 0 : index
    %c0_152 = arith.constant 0 : index
    %346 = vector.load %arg17[%345, %c0_151, %c0_152] : memref<8x8x128xf32, #tpu.memory_space<vmem>>, vector<1x8x128xf32>
    %347 = vector.shape_cast %346 : vector<1x8x128xf32> to vector<8x128xf32>
    %348 = arith.select %31, %344, %347 : vector<8x128xi1>, vector<8x128xf32>
    %cst_153 = arith.constant dense<0.000000e+00> : vector<8x128xf32>
    %349 = tpu.matmul %328, %9, %cst_153 {dimension_numbers = #tpu.dot_dimension_numbers<[1], [0], [0], [1], [0, 0, 1, 1], [], []>} : vector<8x32xf32>, vector<32x128xf32>, vector<8x128xf32> -> vector<8x128xf32>
    %350 = arith.addf %348, %349 : vector<8x128xf32>
    %351 = math.tanh %350 : vector<8x128xf32>
    %352 = vector.extract_strided_slice %351 {offsets = [0, 0], sizes = [8, 32], strides = [1, 1]} : vector<8x128xf32> to vector<8x32xf32>
    %cst_154 = arith.constant 5.000000e-01 : f32
    %353 = vector.broadcast %cst_154 : f32 to vector<8x32xf32>
    %354 = arith.mulf %353, %352 : vector<8x32xf32>
    %cst_155 = arith.constant 5.000000e-01 : f32
    %355 = vector.broadcast %cst_155 : f32 to vector<8x32xf32>
    %356 = arith.addf %354, %355 : vector<8x32xf32>
    %357 = vector.extract_strided_slice %351 {offsets = [0, 32], sizes = [8, 32], strides = [1, 1]} : vector<8x128xf32> to vector<8x32xf32>
    %cst_156 = arith.constant 5.000000e-01 : f32
    %358 = vector.broadcast %cst_156 : f32 to vector<8x32xf32>
    %359 = arith.mulf %358, %357 : vector<8x32xf32>
    %cst_157 = arith.constant 5.000000e-01 : f32
    %360 = vector.broadcast %cst_157 : f32 to vector<8x32xf32>
    %361 = arith.addf %359, %360 : vector<8x32xf32>
    %362 = vector.extract_strided_slice %351 {offsets = [0, 64], sizes = [8, 32], strides = [1, 1]} : vector<8x128xf32> to vector<8x32xf32>
    %cst_158 = arith.constant 5.000000e-01 : f32
    %363 = vector.broadcast %cst_158 : f32 to vector<8x32xf32>
    %364 = arith.mulf %363, %362 : vector<8x32xf32>
    %cst_159 = arith.constant 5.000000e-01 : f32
    %365 = vector.broadcast %cst_159 : f32 to vector<8x32xf32>
    %366 = arith.addf %364, %365 : vector<8x32xf32>
    %367 = vector.extract_strided_slice %351 {offsets = [0, 96], sizes = [8, 32], strides = [1, 1]} : vector<8x128xf32> to vector<8x32xf32>
    %368 = arith.mulf %361, %326 : vector<8x32xf32>
    %369 = arith.mulf %356, %367 : vector<8x32xf32>
    %370 = arith.addf %368, %369 : vector<8x32xf32>
    %371 = math.tanh %370 : vector<8x32xf32>
    %372 = arith.mulf %366, %371 : vector<8x32xf32>
    %373 = vector.extract_strided_slice %372 {offsets = [0, 0], sizes = [8, 16], strides = [1, 1]} : vector<8x32xf32> to vector<8x16xf32>
    %c1_i32_160 = arith.constant 1 : i32
    %374 = arith.addi %c1_i32_160, %c7_i32_147 : i32
    %375 = arith.index_cast %374 : i32 to index
    %c0_161 = arith.constant 0 : index
    %c0_162 = arith.constant 0 : index
    %376 = vector.load %arg18[%375, %c0_161, %c0_162] : memref<10x8x32xf32, #tpu.memory_space<vmem>>, vector<1x8x16xf32>
    %377 = vector.shape_cast %376 : vector<1x8x16xf32> to vector<8x16xf32>
    %378 = vector.shape_cast %373 : vector<8x16xf32> to vector<1x8x16xf32>
    tpu.vector_store %arg18[%375, %c0_161, %c0_162], %378 {strides = array<i32>} : memref<10x8x32xf32, #tpu.memory_space<vmem>>, vector<1x8x16xf32>,
    %379 = vector.extract_strided_slice %372 {offsets = [0, 16], sizes = [8, 16], strides = [1, 1]} : vector<8x32xf32> to vector<8x16xf32>
    %c1_i32_163 = arith.constant 1 : i32
    %380 = arith.addi %c1_i32_163, %341 : i32
    %381 = arith.index_cast %380 : i32 to index
    %c0_164 = arith.constant 0 : index
    %c16_165 = arith.constant 16 : index
    %382 = vector.load %arg18[%381, %c0_164, %c16_165] : memref<10x8x32xf32, #tpu.memory_space<vmem>>, vector<1x8x16xf32>
    %383 = vector.shape_cast %382 : vector<1x8x16xf32> to vector<8x16xf32>
    %384 = vector.shape_cast %379 : vector<8x16xf32> to vector<1x8x16xf32>
    tpu.vector_store %arg18[%381, %c0_164, %c16_165], %384 {strides = array<i32>} : memref<10x8x32xf32, #tpu.memory_space<vmem>>, vector<1x8x16xf32>,
    %c8_i32 = arith.constant 8 : i32
    %c0_166 = arith.constant 0 : index
    %c0_167 = arith.constant 0 : index
    %c0_168 = arith.constant 0 : index
    %385 = vector.load %arg5[%c0_166, %c0_167, %c0_168] : memref<3x32x32xf32, #tpu.memory_space<vmem>>, vector<3x32x32xf32>
    %cst_169 = arith.constant 0.000000e+00 : f32
    %386 = vector.broadcast %cst_169 : f32 to vector<64x32xf32>
    %c0_170 = arith.constant 0 : index
    %c0_171 = arith.constant 0 : index
    %387 = vector.load %arg6[%c0_170, %c0_171] : memref<1x32xf32, #tpu.memory_space<vmem>>, vector<1x32xf32>
    %388 = vector.broadcast %387 : vector<1x32xf32> to vector<64x32xf32>
    %389 = arith.addf %386, %388 : vector<64x32xf32>
    %c0_172 = arith.constant 0 : index
    %c0_173 = arith.constant 0 : index
    %c0_174 = arith.constant 0 : index
    %390 = vector.load %arg18[%c0_172, %c0_173, %c0_174] : memref<10x8x32xf32, #tpu.memory_space<vmem>>, vector<8x8x32xf32>
    %391 = vector.shape_cast %390 : vector<8x8x32xf32> to vector<64x32xf32>
    %392 = vector.extract_strided_slice %385 {offsets = [0, 0, 0], sizes = [1, 32, 32], strides = [1, 1, 1]} : vector<3x32x32xf32> to vector<1x32x32xf32>
    %393 = vector.shape_cast %392 : vector<1x32x32xf32> to vector<32x32xf32>
    %cst_175 = arith.constant dense<0.000000e+00> : vector<64x32xf32>
    %394 = tpu.matmul %391, %393, %cst_175 {dimension_numbers = #tpu.dot_dimension_numbers<[1], [0], [0], [1], [0, 0, 1, 1], [], []>} : vector<64x32xf32>, vector<32x32xf32>, vector<64x32xf32> -> vector<64x32xf32>
    %395 = arith.addf %389, %394 : vector<64x32xf32>
    %c1 = arith.constant 1 : index
    %c0_176 = arith.constant 0 : index
    %c0_177 = arith.constant 0 : index
    %396 = vector.load %arg18[%c1, %c0_176, %c0_177] : memref<10x8x32xf32, #tpu.memory_space<vmem>>, vector<8x8x32xf32>
    %397 = vector.shape_cast %396 : vector<8x8x32xf32> to vector<64x32xf32>
    %398 = vector.extract_strided_slice %385 {offsets = [1, 0, 0], sizes = [1, 32, 32], strides = [1, 1, 1]} : vector<3x32x32xf32> to vector<1x32x32xf32>
    %399 = vector.shape_cast %398 : vector<1x32x32xf32> to vector<32x32xf32>
    %cst_178 = arith.constant dense<0.000000e+00> : vector<64x32xf32>
    %400 = tpu.matmul %397, %399, %cst_178 {dimension_numbers = #tpu.dot_dimension_numbers<[1], [0], [0], [1], [0, 0, 1, 1], [], []>} : vector<64x32xf32>, vector<32x32xf32>, vector<64x32xf32> -> vector<64x32xf32>
    %401 = arith.addf %395, %400 : vector<64x32xf32>
    %c2 = arith.constant 2 : index
    %c0_179 = arith.constant 0 : index
    %c0_180 = arith.constant 0 : index
    %402 = vector.load %arg18[%c2, %c0_179, %c0_180] : memref<10x8x32xf32, #tpu.memory_space<vmem>>, vector<8x8x32xf32>
    %403 = vector.shape_cast %402 : vector<8x8x32xf32> to vector<64x32xf32>
    %404 = vector.extract_strided_slice %385 {offsets = [2, 0, 0], sizes = [1, 32, 32], strides = [1, 1, 1]} : vector<3x32x32xf32> to vector<1x32x32xf32>
    %405 = vector.shape_cast %404 : vector<1x32x32xf32> to vector<32x32xf32>
    %cst_181 = arith.constant dense<0.000000e+00> : vector<64x32xf32>
    %406 = tpu.matmul %403, %405, %cst_181 {dimension_numbers = #tpu.dot_dimension_numbers<[1], [0], [0], [1], [0, 0, 1, 1], [], []>} : vector<64x32xf32>, vector<32x32xf32>, vector<64x32xf32> -> vector<64x32xf32>
    %407 = arith.addf %401, %406 : vector<64x32xf32>
    %408 = vector.shape_cast %407 : vector<64x32xf32> to vector<8x8x32xf32>
    %c0_182 = arith.constant 0 : index
    %c0_183 = arith.constant 0 : index
    %409 = vector.load %arg7[%c0_182, %c0_183] : memref<32x32xf32, #tpu.memory_space<vmem>>, vector<32x32xf32>
    %cst_184 = arith.constant dense<0.000000e+00> : vector<64x32xf32>
    %410 = tpu.matmul %407, %409, %cst_184 {dimension_numbers = #tpu.dot_dimension_numbers<[1], [0], [0], [1], [0, 0, 1, 1], [], []>} : vector<64x32xf32>, vector<32x32xf32>, vector<64x32xf32> -> vector<64x32xf32>
    %c0_185 = arith.constant 0 : index
    %c0_186 = arith.constant 0 : index
    %411 = vector.load %arg8[%c0_185, %c0_186] : memref<1x32xf32, #tpu.memory_space<vmem>>, vector<1x32xf32>
    %412 = vector.broadcast %411 : vector<1x32xf32> to vector<64x32xf32>
    %413 = arith.addf %410, %412 : vector<64x32xf32>
    %414 = math.tanh %413 : vector<64x32xf32>
    %c0_187 = arith.constant 0 : index
    %c0_188 = arith.constant 0 : index
    %415 = vector.load %arg9[%c0_187, %c0_188] : memref<32x1xf32, #tpu.memory_space<vmem>>, vector<32x1xf32>
    %cst_189 = arith.constant dense<0.000000e+00> : vector<64x1xf32>
    %416 = tpu.matmul %414, %415, %cst_189 {dimension_numbers = #tpu.dot_dimension_numbers<[1], [0], [0], [1], [0, 0, 1, 1], [], []>} : vector<64x32xf32>, vector<32x1xf32>, vector<64x1xf32> -> vector<64x1xf32>
    %417 = vector.shape_cast %416 : vector<64x1xf32> to vector<8x8x1xf32>
    %cst_190 = arith.constant dense<0xFF800000> : vector<8x1xf32>
    %418 = vector.multi_reduction <maximumf>, %417, %cst_190 [0] : vector<8x8x1xf32> to vector<8x1xf32>
    %419 = vector.shape_cast %418 : vector<8x1xf32> to vector<1x8x1xf32>
    %420 = vector.broadcast %419 : vector<1x8x1xf32> to vector<8x8x1xf32>
    %421 = arith.subf %417, %420 : vector<8x8x1xf32>
    %422 = math.exp %421 : vector<8x8x1xf32>
    %cst_191 = arith.constant dense<0.000000e+00> : vector<8x1xf32>
    %423 = vector.multi_reduction <add>, %422, %cst_191 [0] : vector<8x8x1xf32> to vector<8x1xf32>
    %424 = vector.shape_cast %423 : vector<8x1xf32> to vector<1x8x1xf32>
    %425 = vector.broadcast %424 : vector<1x8x1xf32> to vector<8x8x1xf32>
    %426 = arith.divf %422, %425 : vector<8x8x1xf32>
    %427 = vector.broadcast %426 : vector<8x8x1xf32> to vector<8x8x32xf32>
    %428 = arith.mulf %427, %408 : vector<8x8x32xf32>
    %cst_192 = arith.constant dense<0.000000e+00> : vector<8x32xf32>
    %429 = vector.multi_reduction <add>, %428, %cst_192 [0] : vector<8x8x32xf32> to vector<8x32xf32>
    %430 = vector.shape_cast %426 : vector<8x8x1xf32> to vector<8x8xf32>
    %431 = tpu.transpose %430, [1, 0] : vector<8x8xf32> -> vector<8x8xf32>
    %c0_193 = arith.constant 0 : index
    %c0_194 = arith.constant 0 : index
    %432 = vector.load %arg15[%c0_193, %c0_194] : memref<8x8xf32, #tpu.memory_space<vmem>>, vector<8x8xf32>
    tpu.vector_store %arg15[%c0_193, %c0_194], %431 {strides = array<i32>} : memref<8x8xf32, #tpu.memory_space<vmem>>, vector<8x8xf32>,
    %c0_195 = arith.constant 0 : index
    %c0_196 = arith.constant 0 : index
    %433 = vector.load %arg1[%c0_195, %c0_196] : memref<8x4xf32, #tpu.memory_space<vmem>>, vector<8x4xf32>
    %c0_197 = arith.constant 0 : index
    %c0_198 = arith.constant 0 : index
    %434 = vector.load %arg10[%c0_197, %c0_198] : memref<4x32xf32, #tpu.memory_space<vmem>>, vector<4x32xf32>
    %cst_199 = arith.constant dense<0.000000e+00> : vector<8x32xf32>
    %435 = tpu.matmul %433, %434, %cst_199 {dimension_numbers = #tpu.dot_dimension_numbers<[1], [0], [0], [1], [0, 0, 1, 1], [], []>} : vector<8x4xf32>, vector<4x32xf32>, vector<8x32xf32> -> vector<8x32xf32>
    %c0_200 = arith.constant 0 : index
    %c0_201 = arith.constant 0 : index
    %436 = vector.load %arg11[%c0_200, %c0_201] : memref<1x32xf32, #tpu.memory_space<vmem>>, vector<1x32xf32>
    %437 = vector.broadcast %436 : vector<1x32xf32> to vector<8x32xf32>
    %438 = arith.addf %435, %437 : vector<8x32xf32>
    %cst_202 = arith.constant 0.000000e+00 : f32
    %439 = vector.broadcast %cst_202 : f32 to vector<8x32xf32>
    %440 = arith.maximumf %438, %439 : vector<8x32xf32>
    %c0_203 = arith.constant 0 : index
    %c0_204 = arith.constant 0 : index
    %441 = vector.load %arg16[%c0_203, %c0_204] : memref<8x32xf32, #tpu.memory_space<vmem>>, vector<8x32xf32>
    tpu.vector_store %arg16[%c0_203, %c0_204], %440 {strides = array<i32>} : memref<8x32xf32, #tpu.memory_space<vmem>>, vector<8x32xf32>,
    %c0_205 = arith.constant 0 : index
    %c0_206 = arith.constant 0 : index
    %442 = vector.load %arg12[%c0_205, %c0_206] : memref<64x1xf32, #tpu.memory_space<vmem>>, vector<64x1xf32>
    %443 = vector.extract_strided_slice %442 {offsets = [0, 0], sizes = [32, 1], strides = [1, 1]} : vector<64x1xf32> to vector<32x1xf32>
    %cst_207 = arith.constant dense<0.000000e+00> : vector<8x1xf32>
    %444 = tpu.matmul %429, %443, %cst_207 {dimension_numbers = #tpu.dot_dimension_numbers<[1], [0], [0], [1], [0, 0, 1, 1], [], []>} : vector<8x32xf32>, vector<32x1xf32>, vector<8x1xf32> -> vector<8x1xf32>
    %445 = vector.extract_strided_slice %442 {offsets = [32, 0], sizes = [32, 1], strides = [1, 1]} : vector<64x1xf32> to vector<32x1xf32>
    %cst_208 = arith.constant dense<0.000000e+00> : vector<8x1xf32>
    %446 = tpu.matmul %440, %445, %cst_208 {dimension_numbers = #tpu.dot_dimension_numbers<[1], [0], [0], [1], [0, 0, 1, 1], [], []>} : vector<8x32xf32>, vector<32x1xf32>, vector<8x1xf32> -> vector<8x1xf32>
    %447 = arith.addf %444, %446 : vector<8x1xf32>
    %c0_209 = arith.constant 0 : index
    %c0_210 = arith.constant 0 : index
    %448 = vector.load %arg13[%c0_209, %c0_210] : memref<1x1xf32, #tpu.memory_space<vmem>>, vector<1x1xf32>
    %449 = vector.broadcast %448 : vector<1x1xf32> to vector<8x1xf32>
    %450 = arith.addf %447, %449 : vector<8x1xf32>
    %c0_211 = arith.constant 0 : index
    %c0_212 = arith.constant 0 : index
    %451 = vector.load %arg14[%c0_211, %c0_212] : memref<8x1xf32, #tpu.memory_space<vmem>>, vector<8x1xf32>
    tpu.vector_store %arg14[%c0_211, %c0_212], %450 {strides = array<i32>} : memref<8x1xf32, #tpu.memory_space<vmem>>, vector<8x1xf32>,
    return
  }
}

</mosaic_0001>

<bundles_post_ra>
// kernel: tpu_custom_call.1
= control target key start
LH: loop header
LB: loop body
LE: loop exit
PB: predicated region body
PF: predicated region fallthrough
CT: control target
= control target key end

     0   :  { %s3728_s0 = inlined_call_operand.hbm [shape: f32[8,8,8], index: 0, kind: input, shape index: {}]   ;;  %s3729_s1 = inlined_call_operand.vmem [shape: f32[8,4], index: 1, kind: input, shape index: {}]   ;;  %s3730_s2 = inlined_call_operand.hbm [shape: f32[8,128], index: 2, kind: input, shape index: {}]   ;;  %s3731_s3 = inlined_call_operand.vmem [shape: f32[32,128], index: 3, kind: input, shape index: {}]   ;;  %s3732_s4 = inlined_call_operand.hbm [shape: f32[1,128], index: 4, kind: input, shape index: {}]   ;;  %s3733_s5 = inlined_call_operand.vmem [shape: f32[3,32,32], index: 5, kind: input, shape index: {}]   ;;  %s3734_s6 = inlined_call_operand.vmem [shape: f32[1,32], index: 6, kind: input, shape index: {}]   ;;  %s3735_s7 = inlined_call_operand.hbm [shape: f32[32,32], index: 7, kind: input, shape index: {}]   ;;  %s3736_s8 = inlined_call_operand.vmem [shape: f32[1,32], index: 8, kind: input, shape index: {}]   ;;  %s3737_s9 = inlined_call_operand.vmem [shape: f32[32,1], index: 9, kind: input, shape index: {}]   ;;  %s3738_s10 = inlined_call_operand.vmem [shape: f32[4,32], index: 10, kind: input, shape index: {}]   ;;  %s3739_s11 = inlined_call_operand.vmem [shape: f32[1,32], index: 11, kind: input, shape index: {}]   ;;  %s3740_s12 = inlined_call_operand.vmem [shape: f32[64,1], index: 12, kind: input, shape index: {}]   ;;  %s3741_s13 = inlined_call_operand.<no memory space> [shape: f32[1,1], index: 13, kind: input, shape index: {}]   ;;  %s3742_s14 = inlined_call_operand.vmem [shape: f32[8,1], index: 14, kind: output, shape index: {0}]   ;;  %s3743_s15 = inlined_call_operand.hbm [shape: f32[8,8], index: 15, kind: output, shape index: {1}]   ;;  %s3744_s16 = inlined_call_operand.hbm [shape: f32[8,32], index: 16, kind: output, shape index: {2}]  }
   0x1   :  { %3746 = sst [smem:[#allocation21_spill]] %s3728_s0  ;;  %v22_v0 = vstv %s3741_s13 }
   0x2   :  { %23 = vst [vmem:[#allocation4] sm:$0x1] %v22_v0 }
   0x3   :  { %24 = vsyncpa [#allocation6], 0 }
   0x4   :  { %25 = vsyncpa [#allocation9], 0 }
   0x5   :  { %26 = vsyncpa [#allocation12], 0 }
   0x6   :  { %27 = vsyncpa [#allocation7], 0 }
   0x7   :  { %28 = vsyncpa [#allocation15], 0  ;;  %s3108_s23 = smov [#allocation8]   ;;  %s3109_s25 = smov [#allocation5]  }
   0x8   :  { %s49_s24 = sshll.u32 %s3108_s23, 4  ;;  %s34_s26 = sshll.u32 %s3109_s25, 4  ;;  %s50_s24 = int_to_ptr.vmem [resolvable:$true] %s49_s24  ;;  %s3210_s26 = int_to_ptr.vmem [resolvable:$true] %s34_s26 }
   0x9   :  { %s2966_s29 = scalar_lea.hbm %s3730_s2, 128 }
   0xa   :  { %p2967_p0 = scmp.ne.s32.totalorder %s3730_s2, %s2966_s29  ;;  %p2970_p1 = scmp.lt.u32.totalorder %s2966_s29, %s3730_s2 }
   0xc   :  { %p2972_p2 = pnand %p2970_p1, %p2967_p0 }
   0xe   :  { %2975 = shalt.err (!%p2972_p2)
}
   0xf   :  { %s2976_s18 = scalar_lea.vmem %s50_s24, 128  ;;  %p2981_p4 = scmp.lt.s32.totalorder %s50_s24, %s50_s24 }
  0x10   :  { %p2977_p3 = scmp.ne.s32.totalorder %s50_s24, %s2976_s18  ;;  %p2982_p5 = scmp.lt.s32.totalorder %s2976_s18, %s2976_s18 }
  0x12   :  { %p2983_p6 = por %p2982_p5, %p2981_p4 }
  0x14   :  { %p2984_p7 = pnand %p2983_p6, %p2977_p3 }
  0x16   :  { %2987 = shalt.err (!%p2984_p7)
}
  0x17   :  { %52 = dma.hbm_to_vmem [thread:$0]  %s3730_s2, 128, %s50_s24, [#allocation9]  }
  0x18   :  { %s3747_s23 = sld [smem:[#allocation21_spill]] }
  0x1e   :  { %s2988_s25 = scalar_lea.hbm %s3747_s23, 1024 }
  0x1f   :  { %p2989_p8 = scmp.ne.s32.totalorder %s3747_s23, %s2988_s25  ;;  %p2992_p9 = scmp.lt.u32.totalorder %s2988_s25, %s3747_s23 }
  0x21   :  { %p2994_p10 = pnand %p2992_p9, %p2989_p8 }
  0x23   :  { %2997 = shalt.err (!%p2994_p10)
}
  0x24   :  { %s2998_s0 = scalar_lea.vmem %s3210_s26, 1024  ;;  %p3003_p12 = scmp.lt.s32.totalorder %s3210_s26, %s3210_s26 }
  0x25   :  { %p2999_p11 = scmp.ne.s32.totalorder %s3210_s26, %s2998_s0  ;;  %p3004_p13 = scmp.lt.s32.totalorder %s2998_s0, %s2998_s0 }
  0x27   :  { %p3005_p0 = por %p3004_p13, %p3003_p12 }
  0x29   :  { %p3006_p1 = pnand %p3005_p0, %p2999_p11 }
  0x2b   :  { %3009 = shalt.err (!%p3006_p1)
}
  0x2c   :  { %s3110_s2 = smov 128   ;;  %s3111_s24 = smov 8  }
  0x2d   :  { %40 = dma.hbm_to_vmem [thread:$0]  %s3747_s23, 1024, %s3210_s26, [#allocation6], %s3110_s2, %s3110_s2, %s3111_s24  }
  0x2e   :  { %s3112_s18 = smov [#allocation10]   ;;  %s3113_s20 = smov [#allocation11]  }
  0x2f   :  { %s61_s19 = sshll.u32 %s3112_s18, 4  ;;  %s74_s21 = sshll.u32 %s3113_s20, 4  ;;  %s62_s19 = int_to_ptr.vmem [resolvable:$true] %s61_s19  ;;  %s3244_s21 = int_to_ptr.vmem [resolvable:$true] %s74_s21 }
  0x30   :  { %s3010_s27 = scalar_lea.hbm %s3732_s4, 16 }
  0x31   :  { %p3011_p2 = scmp.ne.s32.totalorder %s3732_s4, %s3010_s27  ;;  %p3014_p3 = scmp.lt.u32.totalorder %s3010_s27, %s3732_s4 }
  0x33   :  { %p3016_p4 = pnand %p3014_p3, %p3011_p2 }
  0x35   :  { %3019 = shalt.err (!%p3016_p4)
}
  0x36   :  { %s3020_s26 = scalar_lea.vmem %s62_s19, 16  ;;  %s3024_s23 = scalar_lea.vmem %s62_s19, 32 }
  0x37   :  { %p3021_p5 = scmp.ne.s32.totalorder %s62_s19, %s3020_s26  ;;  %p3025_p6 = scmp.lt.s32.totalorder %s62_s19, %s62_s19 }
  0x38   :  { %p3026_p7 = scmp.lt.s32.totalorder %s3024_s23, %s3020_s26 }
  0x3a   :  { %p3027_p8 = por %p3026_p7, %p3025_p6 }
  0x3c   :  { %p3028_p9 = pnand %p3027_p8, %p3021_p5 }
  0x3e   :  { %3031 = shalt.err (!%p3028_p9)
}
  0x3f   :  { %64 = dma.hbm_to_vmem [thread:$0]  %s3732_s4, 16, %s62_s19, [#allocation9]  }
  0x40   :  { %s3032_s22 = scalar_lea.hbm %s3735_s7, 512 }
  0x41   :  { %p3033_p10 = scmp.ne.s32.totalorder %s3735_s7, %s3032_s22  ;;  %p3036_p11 = scmp.lt.u32.totalorder %s3032_s22, %s3735_s7 }
  0x43   :  { %p3038_p12 = pnand %p3036_p11, %p3033_p10 }
  0x45   :  { %3041 = shalt.err (!%p3038_p12)
}
  0x46   :  { %s3042_s30 = scalar_lea.vmem %s3244_s21, 512  ;;  %p3047_p0 = scmp.lt.s32.totalorder %s3244_s21, %s3244_s21 }
  0x47   :  { %p3043_p13 = scmp.ne.s32.totalorder %s3244_s21, %s3042_s30  ;;  %p3048_p1 = scmp.lt.s32.totalorder %s3042_s30, %s3042_s30 }
  0x49   :  { %p3049_p2 = por %p3048_p1, %p3047_p0 }
  0x4b   :  { %p3050_p3 = pnand %p3049_p2, %p3043_p13 }
  0x4d   :  { %3053 = shalt.err (!%p3050_p3)
}
  0x4e   :  { %80 = dma.hbm_to_vmem [thread:$0]  %s3735_s7, 512, %s3244_s21, [#allocation12], %s3110_s2, %s3110_s2, %s3111_s24  }
  0x4f   :  { %3098 = dma.done.wait [#allocation6], 1024  }
  0x50   :  { %3099 = vsyncadd [#allocation6], 4294966272 }
  0x51   :  { %3100 = dma.done.wait [#allocation9], 144  }
  0x52   :  { %3101 = vsyncadd [#allocation9], 4294967152 }
  0x53   :  { %3102 = dma.done.wait [#allocation12], 512  }
  0x54   :  { %3103 = vsyncadd [#allocation12], 4294966784  ;;  %v3114_v1 = vmov 0.0|0.0   ;;  %vm3115_vm0 = vmmov 0   ;;  %v3116_v2 = vmov 0.0   ;;  %vm121_vm1 = vcmask 64512  }
  0x55   :  { %2760 = vmatprep.subr.bf16.mxu1 %v3114_v1  ;;  %2553 = vmatprep.mubr.msk.f32.mxu1 %vm3115_vm0, %v3116_v2  ;;  %v113_v3 = vld [vmem:[#allocation8] sm:$0xff]  ;;  %v106_v5 = vld [vmem:[#allocation5 + $0x8] sm:$0xff]  ;;  %v107_v6 = vld [vmem:[#allocation5 + $0x10] sm:$0xff]  ;;  %v267_v18 = vlaneseq  ;;  %vm263_vm3 = vcmask 261120   ;;  %s3118_s17 = smov 64   ;;  %vm385_vm4 = vcmask 130048  }
  0x56   :  { %v105_v4 = vld [vmem:[#allocation5] sm:$0xff]  ;;  %2531 = vmatprep.subr.mxu0 %v113_v3  ;;  %v259_v7 = vld [vmem:[%s3731_s3] sm:$0xff]  ;;  %v260_v8 = vld [vmem:[%s3731_s3 + $0x8] sm:$0xff]  ;;  %264 = vst.msk [vmem:[#allocation3] sm:$0xff] %vm263_vm3, %v3116_v2  ;;  %vm388_vm5 = vcmask 261248   ;;  %vm2072_vm6 = vcmask 1043456  }
  0x57   :  { %2533 = vmatprep.mubr.msk.f32.mxu0 %vm121_vm1, %v105_v4  ;;  %2532 = vmatpush3.msra.mxu0 %v113_v3  ;;  %v3289_v9 = vpack.c.bf16 %v260_v8, %v259_v7  ;;  %v261_v10 = vld [vmem:[%s3731_s3 + $0x10] sm:$0xff]  ;;  %v262_v11 = vld [vmem:[%s3731_s3 + $0x18] sm:$0xff]  ;;  %v111_v16 = vld [vmem:[#allocation5 + $0x30] sm:$0xff]  ;;  %v268_v19 = vand.u32 127, %v267_v18  ;;  %v1980_v20 = vshrl.u32 %v267_v18, 7  ;;  %s3117_s3 = smov 32  }
  0x58   :  { %2534 = vmatmul.mubr.msk.f32.vlgmr.msra.gmra.mrb[0].mxu0 %vm121_vm1, %v106_v5  ;;  %2772 = vmatprep.subr.bf16.mxu0 %v3114_v1  ;;  %v108_v12 = vld [vmem:[#allocation5 + $0x18] sm:$0xff]  ;;  %v109_v13 = vld [vmem:[#allocation5 + $0x20] sm:$0xff]  ;;  %v3300_v14 = vpack.c.bf16 %v262_v11, %v261_v10  ;;  %v110_v15 = vld [vmem:[#allocation5 + $0x28] sm:$0xff]  ;;  %266 = vst.msk [vmem:[#allocation3 + $0x48] sm:$0xff] %vm263_vm3, %v3116_v2  ;;  %vm2068_vm7 = vcmask 31744   ;;  %vm1852_vm8 = vcmask 7168  }
  0x59   :  { %2536 = vmatprep.mubr.msk.f32.mxu0 %vm121_vm1, %v107_v6  ;;  %2762 = vmatpush3.bf16.msra.mxu1 %v3289_v9  ;;  %v112_v17 = vld [vmem:[#allocation5 + $0x38] sm:$0xff]  ;;  %v3323_v21 = vsub.s32 %v268_v19, %v1980_v20  ;;  %v2346_v22 = vld [vmem:[#allocation10] ss:$0 sm:$0xff]  ;;  %v273_v27 = vand.u32 31, %v268_v19  ;;  %v1116_v32 = vld [vmem:[%s3733_s5] sm:$0xff]  ;;  %vm2011_vm9 = vcmask 1041409  }
  0x5a   :  { %2774 = vmatpush3.bf16.msra.mxu0 %v3289_v9  ;;  %2763 = vmatprep.subr.bf16.mxu1 %v3114_v1  ;;  %vm2013_vm10 = vcmask 1042434   ;;  %vm2015_vm11 = vcmask 1043459   ;;  %vm2017_vm12 = vcmask 1044484   ;;  %vm2019_vm13 = vcmask 1045509  }
  0x5b   :  { %2775 = vmatprep.subr.bf16.mxu0 %v3114_v1  ;;  %vm3331_vm2 = vcmp.lt.s32.totalorder %v273_v27, 16  ;;  %vm2021_vm14 = vcmask 1046534   ;;  %vm2023_vm15 = vcmask 1047559  }
  0x5c   :  { %2537 = vmatmul.mubr.msk.f32.gmra.mrb[2].mxu0 %vm121_vm1, %v108_v12 }
  0x5d   :  { %2539 = vmatprep.mubr.msk.f32.mxu0 %vm121_vm1, %v109_v13  ;;  %2765 = vmatpush3.bf16.msra.mxu1 %v3300_v14 }
  0x5e   :  { %2777 = vmatpush3.bf16.msra.mxu0 %v3300_v14  ;;  %2766 = vmatprep.subr.bf16.mxu1 %v3114_v1 }
  0x5f   :  { %2784 = vmatprep.subr.bf16.mxu0 %v3114_v1 }
  0x60   :  { %2540 = vmatmul.mubr.msk.f32.gmra.mrb[4].mxu0 %vm121_vm1, %v110_v15  ;;  %2554 = vmatmul.mubr.f32.vlgmr.msra.gmra.mrb[0].mxu1 %v3116_v2 }
  0x61   :  { %2542 = vmatprep.mubr.msk.f32.mxu0 %vm121_vm1, %v111_v16  ;;  %2768 = vmatpush3.bf16.msra.mxu1 %v3289_v9 }
  0x62   :  { %2564 = vmatprep.mubr.msk.f32.mxu1 %vm3115_vm0, %v3116_v2  ;;  %2769 = vmatprep.subr.bf16.mxu1 %v3114_v1 }
  0x64   :  { %2543 = vmatmul.mubr.msk.f32.gmra.mrb[6].mxu0 %vm121_vm1, %v112_v17 }
  0x65   :  { %2575 = vmatprep.mubr.msk.f32.mxu0 %vm3115_vm0, %v3116_v2  ;;  %2771 = vmatpush3.bf16.msra.mxu1 %v3300_v14 }
  0x66   :  { %2778 = vmatprep.subr.bf16.mxu1 %v3114_v1 }
 0x12b   :  { %v2535_v23 = vpop.f32.mrb[0].mxu0 }
 0x12c   :  { %v3325_v24 = vadd.f32 %v2535_v23, %v2346_v22  ;;  %v212_v25 = vpop.f32.mrb[1].mxu0 }
 0x12d   :  { %v3355_v43 = vadd.f32 %v2346_v22, %v212_v25 }
 0x12f   :  { %v2538_v26 = vpop.f32.mrb[2].mxu0 }
 0x130   :  { %v3327_v28 = vadd.f32 %v2538_v26, %v2346_v22  ;;  %v222_v29 = vpop.f32.mrb[3].mxu0 }
 0x131   :  { %v3329_v30 = vadd.f32 %v2346_v22, %v222_v29 }
 0x133   :  { %v2541_v31 = vpop.f32.mrb[4].mxu0  ;;  %v355_v35 = vpop.f32.mrb[0].mxu1 }
 0x134   :  { %v3335_v33 = vadd.f32 %v2541_v31, %v2346_v22  ;;  %v232_v34 = vpop.f32.mrb[5].mxu0  ;;  %v2555_v37 = vpop.f32.mrb[1].mxu1 }
 0x135   :  { %v3337_v36 = vadd.f32 %v2346_v22, %v232_v34 }
 0x136   :  { %v500_v38 = vsel %vm3331_vm2, %v3329_v30, %v3335_v33  ;;  %v812_v39 = vsel %vm3331_vm2, %v3335_v33, %v3329_v30 }
 0x137   :  { %v2544_v40 = vpop.f32.mrb[6].mxu0  ;;  %v606_v41 = vsel %vm3331_vm2, %v3327_v28, %v3337_v36  ;;  %v710_v42 = vsel %vm3331_vm2, %v3337_v36, %v3327_v28 }
 0x138   :  { %v3357_v44 = vadd.f32 %v2544_v40, %v2346_v22  ;;  %v242_v45 = vpop.f32.mrb[7].mxu0 }
 0x139   :  { %v3359_v46 = vadd.f32 %v2346_v22, %v242_v45 }
 0x13a   :  { %v285_v47 = vsel %vm3331_vm2, %v3355_v43, %v3357_v44  ;;  %v1016_v48 = vsel %vm3331_vm2, %v3357_v44, %v3355_v43  ;;  %v1117_v43 = vld [vmem:[%s3733_s5 + $0x8] sm:$0xff] }
 0x13b   :  { %v359_v49 = vadd.f32 %v355_v35, %v285_v47  ;;  %v394_v50 = vsel %vm3331_vm2, %v3325_v24, %v3359_v46  ;;  %v914_v51 = vsel %vm3331_vm2, %v3359_v46, %v3325_v24  ;;  %v2808_v44 = vpack.c.bf16 %v1117_v43, %v1116_v32  ;;  %v2387_v32 = vld [vmem:[%s3736_s8] ss:$0 sm:$0xff] }
 0x13d   :  { %2900 = vtanh.f32 %v359_v49 }
 0x147   :  { %v2901_v52 = vpop.eup %2900 }
 0x148   :  { %365 = vrot.lane.b32.xlu0 %v2901_v52, %s3117_s3  ;;  %v361_v53 = vmul.f32 0.5, %v2901_v52 }
 0x14a   :  { %v362_v54 = vadd.f32 0.5, %v361_v53 }
 0x14c   :  { %v363_v57 = vmul.f32 0.0, %v362_v54 }
 0x1ba   :  { %v366_v55 = vpop.permute.xlu0 %365 }
 0x1bb   :  { %v368_v56 = vmul.f32 %v366_v55, %v362_v54 }
 0x1bd   :  { %370 = vrot.lane.b32.xlu0 %v368_v56, %s3117_s3 }
 0x22f   :  { %v371_v58 = vpop.permute.xlu0 %370 }
 0x230   :  { %v373_v59 = vadd.f32 %v371_v58, %v363_v57 }
 0x232   :  { %2902 = vtanh.f32 %v373_v59 }
 0x23c   :  { %v2903_v60 = vpop.eup %2902 }
 0x23d   :  { %376 = vrot.lane.b32.xlu1 %v2903_v60, %s3117_s3 }
 0x2af   :  { %v377_v61 = vpop.permute.xlu1 %376 }
 0x2b0   :  { %v379_v62 = vmul.f32 %v377_v61, %v362_v54 }
 0x2b2   :  { %381 = vrot.lane.b32.xlu1 %v379_v62, %s3118_s17 }
 0x324   :  { %v382_v63 = vpop.permute.xlu1 %381 }
 0x325   :  { %386 = vst.msk [vmem:[#allocation3 + $0x8] sm:$0xff] %vm385_vm4, %v382_v63  ;;  %2565 = vmatmul.mubr.msk.f32.vlgmr.msra.gmra.mrb[2].mxu1 %vm263_vm3, %v382_v63 }
 0x326   :  { %389 = vst.msk [vmem:[#allocation3 + $0x40] sm:$0xff] %vm388_vm5, %v382_v63  ;;  %2780 = vmatpush3.bf16.msra.mxu1 %v3289_v9  ;;  %2586 = vmatprep.mubr.msk.f32.mxu1 %vm3115_vm0, %v3116_v2 }
 0x327   :  { %2781 = vmatprep.subr.bf16.mxu1 %v3114_v1 }
 0x32a   :  { %2783 = vmatpush3.bf16.msra.mxu1 %v3300_v14 }
 0x32b   :  { %2790 = vmatprep.subr.bf16.mxu1 %v3114_v1 }
 0x3f8   :  { %v463_v0 = vpop.f32.mrb[2].mxu1 }
 0x3f9   :  { %v467_v3 = vadd.f32 %v463_v0, %v394_v50  ;;  %v2566_v4 = vpop.f32.mrb[3].mxu1 }
 0x3fb   :  { %2904 = vtanh.f32 %v467_v3 }
 0x405   :  { %v2905_v5 = vpop.eup %2904 }
 0x406   :  { %473 = vrot.lane.b32.xlu0 %v2905_v5, %s3117_s3  ;;  %v469_v6 = vmul.f32 0.5, %v2905_v5 }
 0x408   :  { %v470_v7 = vadd.f32 0.5, %v469_v6 }
 0x40a   :  { %v471_v11 = vmul.f32 %v470_v7, %v373_v59 }
 0x478   :  { %v474_v8 = vpop.permute.xlu0 %473 }
 0x479   :  { %v476_v10 = vmul.f32 %v474_v8, %v470_v7 }
 0x47b   :  { %478 = vrot.lane.b32.xlu1 %v476_v10, %s3117_s3 }
 0x4ed   :  { %v479_v12 = vpop.permute.xlu1 %478 }
 0x4ee   :  { %v481_v13 = vadd.f32 %v479_v12, %v471_v11 }
 0x4f0   :  { %2906 = vtanh.f32 %v481_v13 }
 0x4fa   :  { %v2907_v15 = vpop.eup %2906 }
 0x4fb   :  { %484 = vrot.lane.b32.xlu0 %v2907_v15, %s3117_s3 }
 0x56d   :  { %v485_v16 = vpop.permute.xlu0 %484 }
 0x56e   :  { %v487_v17 = vmul.f32 %v485_v16, %v470_v7 }
 0x570   :  { %489 = vrot.lane.b32.xlu1 %v487_v17, %s3118_s17 }
 0x5e2   :  { %v490_v18 = vpop.permute.xlu1 %489 }
 0x5e3   :  { %493 = vst.msk [vmem:[#allocation3 + $0x10] sm:$0xff] %vm385_vm4, %v490_v18  ;;  %2576 = vmatmul.mubr.msk.f32.vlgmr.msra.gmra.mrb[8].mxu0 %vm263_vm3, %v490_v18 }
 0x5e4   :  { %495 = vst.msk [vmem:[#allocation3 + $0x38] sm:$0xff] %vm388_vm5, %v490_v18  ;;  %2786 = vmatpush3.bf16.msra.mxu0 %v3289_v9  ;;  %2597 = vmatprep.mubr.msk.f32.mxu0 %vm3115_vm0, %v3116_v2 }
 0x5e5   :  { %2787 = vmatprep.subr.bf16.mxu0 %v3114_v1 }
 0x5e8   :  { %2789 = vmatpush3.bf16.msra.mxu0 %v3300_v14 }
 0x5e9   :  { %2796 = vmatprep.subr.bf16.mxu0 %v3114_v1 }
 0x6b6   :  { %v569_v19 = vpop.f32.mrb[8].mxu0 }
 0x6b7   :  { %v573_v20 = vadd.f32 %v569_v19, %v500_v38  ;;  %v2577_v22 = vpop.f32.mrb[9].mxu0 }
 0x6b9   :  { %2908 = vtanh.f32 %v573_v20 }
 0x6c3   :  { %v2909_v23 = vpop.eup %2908 }
 0x6c4   :  { %579 = vrot.lane.b32.xlu0 %v2909_v23, %s3117_s3  ;;  %v575_v25 = vmul.f32 0.5, %v2909_v23 }
 0x6c6   :  { %v576_v26 = vadd.f32 0.5, %v575_v25 }
 0x6c8   :  { %v577_v31 = vmul.f32 %v576_v26, %v481_v13 }
 0x736   :  { %v580_v27 = vpop.permute.xlu0 %579 }
 0x737   :  { %v582_v29 = vmul.f32 %v580_v27, %v576_v26 }
 0x739   :  { %584 = vrot.lane.b32.xlu1 %v582_v29, %s3117_s3 }
 0x7ab   :  { %v585_v34 = vpop.permute.xlu1 %584 }
 0x7ac   :  { %v587_v35 = vadd.f32 %v585_v34, %v577_v31 }
 0x7ae   :  { %2910 = vtanh.f32 %v587_v35 }
 0x7b8   :  { %v2911_v37 = vpop.eup %2910 }
 0x7b9   :  { %590 = vrot.lane.b32.xlu0 %v2911_v37, %s3117_s3 }
 0x82b   :  { %v591_v40 = vpop.permute.xlu0 %590 }
 0x82c   :  { %v593_v38 = vmul.f32 %v591_v40, %v576_v26 }
 0x82e   :  { %595 = vrot.lane.b32.xlu1 %v593_v38, %s3118_s17 }
 0x8a0   :  { %v596_v45 = vpop.permute.xlu1 %595 }
 0x8a1   :  { %599 = vst.msk [vmem:[#allocation3 + $0x18] sm:$0xff] %vm385_vm4, %v596_v45  ;;  %2587 = vmatmul.mubr.msk.f32.vlgmr.msra.gmra.mrb[4].mxu1 %vm263_vm3, %v596_v45 }
 0x8a2   :  { %601 = vst.msk [vmem:[#allocation3 + $0x30] sm:$0xff] %vm388_vm5, %v596_v45  ;;  %2792 = vmatpush3.bf16.msra.mxu1 %v3289_v9  ;;  %2608 = vmatprep.mubr.msk.f32.mxu1 %vm3115_vm0, %v3116_v2 }
 0x8a3   :  { %2793 = vmatprep.subr.bf16.mxu1 %v3114_v1 }
 0x8a6   :  { %2795 = vmatpush3.bf16.msra.mxu1 %v3300_v14 }
 0x8a7   :  { %2802 = vmatprep.subr.bf16.mxu1 %v3114_v1 }
 0x974   :  { %v675_v47 = vpop.f32.mrb[4].mxu1 }
 0x975   :  { %v679_v49 = vadd.f32 %v675_v47, %v606_v41  ;;  %v2588_v50 = vpop.f32.mrb[5].mxu1 }
 0x977   :  { %2912 = vtanh.f32 %v679_v49 }
 0x981   :  { %v2913_v52 = vpop.eup %2912 }
 0x982   :  { %685 = vrot.lane.b32.xlu0 %v2913_v52, %s3117_s3  ;;  %v681_v53 = vmul.f32 0.5, %v2913_v52 }
 0x984   :  { %v682_v54 = vadd.f32 0.5, %v681_v53 }
 0x986   :  { %v683_v57 = vmul.f32 %v682_v54, %v587_v35 }
 0x9f4   :  { %v686_v55 = vpop.permute.xlu0 %685 }
 0x9f5   :  { %v688_v56 = vmul.f32 %v686_v55, %v682_v54 }
 0x9f7   :  { %690 = vrot.lane.b32.xlu1 %v688_v56, %s3117_s3 }
 0xa69   :  { %v691_v58 = vpop.permute.xlu1 %690 }
 0xa6a   :  { %v693_v59 = vadd.f32 %v691_v58, %v683_v57 }
 0xa6c   :  { %2914 = vtanh.f32 %v693_v59 }
 0xa76   :  { %v2915_v60 = vpop.eup %2914 }
 0xa77   :  { %696 = vrot.lane.b32.xlu0 %v2915_v60, %s3117_s3 }
 0xae9   :  { %v697_v61 = vpop.permute.xlu0 %696 }
 0xaea   :  { %v699_v41 = vmul.f32 %v697_v61, %v682_v54 }
 0xaec   :  { %701 = vrot.lane.b32.xlu1 %v699_v41, %s3118_s17 }
 0xb5e   :  { %v702_v62 = vpop.permute.xlu1 %701 }
 0xb5f   :  { %705 = vst.msk [vmem:[#allocation3 + $0x20] sm:$0xff] %vm385_vm4, %v702_v62  ;;  %2598 = vmatmul.mubr.msk.f32.vlgmr.msra.gmra.mrb[10].mxu0 %vm263_vm3, %v702_v62 }
 0xb60   :  { %707 = vst.msk [vmem:[#allocation3 + $0x28] sm:$0xff] %vm388_vm5, %v702_v62  ;;  %2798 = vmatpush3.bf16.msra.mxu0 %v3289_v9  ;;  %2619 = vmatprep.mubr.msk.f32.mxu0 %vm3115_vm0, %v3116_v2  ;;  %v1118_v62 = vld [vmem:[%s3733_s5 + $0x10] sm:$0xff] }
 0xb61   :  { %2799 = vmatprep.subr.bf16.mxu0 %v3114_v1 }
 0xb64   :  { %2801 = vmatpush3.bf16.msra.mxu0 %v3300_v14 }
 0xb65   :  { %2809 = vmatprep.subr.bf16.mxu0 %v2808_v44 }
 0xc32   :  { %v779_v63 = vpop.f32.mrb[10].mxu0 }
 0xc33   :  { %v783_v0 = vadd.f32 %v779_v63, %v710_v42  ;;  %v2599_v3 = vpop.f32.mrb[11].mxu0  ;;  %v1119_v63 = vld [vmem:[%s3733_s5 + $0x18] sm:$0xff] }
 0xc34   :  { %v2812_v3 = vpack.c.bf16 %v1119_v63, %v1118_v62 }
 0xc35   :  { %2916 = vtanh.f32 %v783_v0  ;;  %v1136_v0 = vld [vmem:[#allocation3] sm:$0xff] }
 0xc3f   :  { %v2917_v4 = vpop.eup %2916 }
 0xc40   :  { %789 = vrot.lane.b32.xlu0 %v2917_v4, %s3117_s3  ;;  %v785_v5 = vmul.f32 0.5, %v2917_v4  ;;  %v1120_v4 = vld [vmem:[%s3733_s5 + $0x20] sm:$0xff] }
 0xc42   :  { %v786_v6 = vadd.f32 0.5, %v785_v5  ;;  %v1121_v5 = vld [vmem:[%s3733_s5 + $0x28] sm:$0xff] }
 0xc44   :  { %v787_v10 = vmul.f32 %v786_v6, %v693_v59 }
 0xcb2   :  { %v790_v7 = vpop.permute.xlu0 %789 }
 0xcb3   :  { %v792_v8 = vmul.f32 %v790_v7, %v786_v6 }
 0xcb5   :  { %794 = vrot.lane.b32.xlu1 %v792_v8, %s3117_s3 }
 0xd27   :  { %v795_v11 = vpop.permute.xlu1 %794 }
 0xd28   :  { %v797_v12 = vadd.f32 %v795_v11, %v787_v10  ;;  %v1571_v10 = vld [vmem:[#allocation11] sm:$0xff]  ;;  %v1572_v11 = vld [vmem:[#allocation11 + $0x8] sm:$0xff] }
 0xd2a   :  { %2918 = vtanh.f32 %v797_v12 }
 0xd34   :  { %v2919_v13 = vpop.eup %2918 }
 0xd35   :  { %800 = vrot.lane.b32.xlu0 %v2919_v13, %s3117_s3 }
 0xda7   :  { %v801_v28 = vpop.permute.xlu0 %800 }
 0xda8   :  { %v803_v36 = vmul.f32 %v801_v28, %v786_v6  ;;  %v2816_v6 = vpack.c.bf16 %v1121_v5, %v1120_v4  ;;  %v1122_v28 = vld [vmem:[%s3733_s5 + $0x30] sm:$0xff] }
 0xdaa   :  { %805 = vrot.lane.b32.xlu1 %v803_v36, %s3118_s17  ;;  %v1123_v36 = vld [vmem:[%s3733_s5 + $0x38] sm:$0xff] }
 0xe1c   :  { %v806_v42 = vpop.permute.xlu1 %805 }
 0xe1d   :  { %808 = vst.msk [vmem:[#allocation3 + $0x28] sm:$0xff] %vm385_vm4, %v806_v42  ;;  %2609 = vmatmul.mubr.msk.f32.vlgmr.msra.gmra.mrb[6].mxu1 %vm263_vm3, %v806_v42 }
 0xe1e   :  { %809 = vst.msk [vmem:[#allocation3 + $0x20] sm:$0xff] %vm388_vm5, %v806_v42  ;;  %2804 = vmatpush3.bf16.msra.mxu1 %v3289_v9  ;;  %2630 = vmatprep.mubr.msk.f32.mxu1 %vm3115_vm0, %v3116_v2  ;;  %v2820_v42 = vpack.c.bf16 %v1123_v36, %v1122_v28  ;;  %v2060_v36 = vld [vmem:[%s3738_s10] sm:$0xf] }
 0xe1f   :  { %2805 = vmatprep.subr.bf16.mxu1 %v3114_v1 }
 0xe22   :  { %2807 = vmatpush3.bf16.msra.mxu1 %v3300_v14 }
 0xef0   :  { %v881_v15 = vpop.f32.mrb[6].mxu1 }
 0xef1   :  { %v885_v16 = vadd.f32 %v881_v15, %v812_v39  ;;  %v2610_v17 = vpop.f32.mrb[7].mxu1 }
 0xef2   :  { %v1125_v17 = vld [vmem:[%s3733_s5 + $0x48] sm:$0xff] }
 0xef3   :  { %2920 = vtanh.f32 %v885_v16  ;;  %v1124_v16 = vld [vmem:[%s3733_s5 + $0x40] sm:$0xff] }
 0xefd   :  { %v2921_v18 = vpop.eup %2920 }
 0xefe   :  { %891 = vrot.lane.b32.xlu0 %v2921_v18, %s3117_s3  ;;  %v887_v9 = vmul.f32 0.5, %v2921_v18 }
 0xf00   :  { %v888_v19 = vadd.f32 0.5, %v887_v9  ;;  %v2824_v9 = vpack.c.bf16 %v1125_v17, %v1124_v16 }
 0xf02   :  { %v889_v23 = vmul.f32 %v888_v19, %v797_v12  ;;  %v2832_v12 = vpack.c.bf16 %v1572_v11, %v1571_v10 }
 0xf04   :  { %2833 = vmatprep.subr.bf16.mxu1 %v2832_v12 }
 0xf70   :  { %v892_v20 = vpop.permute.xlu0 %891 }
 0xf71   :  { %v894_v22 = vmul.f32 %v892_v20, %v888_v19  ;;  %v1140_v20 = vld [vmem:[#allocation3 + $0x20] sm:$0xff] }
 0xf73   :  { %896 = vrot.lane.b32.xlu1 %v894_v22, %s3117_s3  ;;  %v1141_v22 = vld [vmem:[#allocation3 + $0x28] sm:$0xff] }
 0xfe5   :  { %v897_v14 = vpop.permute.xlu1 %896 }
 0xfe6   :  { %v899_v25 = vadd.f32 %v897_v14, %v889_v23 }
 0xfe8   :  { %2922 = vtanh.f32 %v899_v25 }
 0xff2   :  { %v2923_v26 = vpop.eup %2922 }
 0xff3   :  { %902 = vrot.lane.b32.xlu0 %v2923_v26, %s3117_s3  ;;  %v1127_v26 = vld [vmem:[%s3733_s5 + $0x58] sm:$0xff] }
0x1065   :  { %v903_v30 = vpop.permute.xlu0 %902 }
0x1066   :  { %v905_v33 = vmul.f32 %v903_v30, %v888_v19 }
0x1068   :  { %907 = vrot.lane.b32.xlu1 %v905_v33, %s3118_s17 }
0x10da   :  { %v908_v39 = vpop.permute.xlu1 %907 }
0x10db   :  { %910 = vst.msk [vmem:[#allocation3 + $0x30] sm:$0xff] %vm385_vm4, %v908_v39  ;;  %2620 = vmatmul.mubr.msk.f32.vlgmr.msra.gmra.mrb[12].mxu0 %vm263_vm3, %v908_v39 }
0x10dc   :  { %911 = vst.msk [vmem:[#allocation3 + $0x18] sm:$0xff] %vm388_vm5, %v908_v39  ;;  %2811 = vmatpush3.bf16.msra.mxu0 %v2808_v44  ;;  %2641 = vmatprep.mubr.msk.f32.mxu0 %vm263_vm3, %v1136_v0  ;;  %v1433_v39 = vld [vmem:[#allocation3 + $0x48] sm:$0xff] }
0x10dd   :  { %2813 = vmatprep.subr.bf16.mxu0 %v2812_v3 }
0x10e0   :  { %2815 = vmatpush3.bf16.msra.mxu0 %v2812_v3 }
0x10e1   :  { %2817 = vmatprep.subr.bf16.mxu0 %v2816_v6 }
0x10e2   :  { %v1142_v23 = vld [vmem:[#allocation3 + $0x30] sm:$0xff] }
0x10e3   :  { %v1139_v19 = vld [vmem:[#allocation3 + $0x18] sm:$0xff] }
0x11ae   :  { %v983_v27 = vpop.f32.mrb[12].mxu0 }
0x11af   :  { %v987_v29 = vadd.f32 %v983_v27, %v914_v51  ;;  %v2621_v31 = vpop.f32.mrb[13].mxu0  ;;  %v1573_v27 = vld [vmem:[#allocation11 + $0x10] sm:$0xff] }
0x11b1   :  { %2924 = vtanh.f32 %v987_v29  ;;  %v1574_v29 = vld [vmem:[#allocation11 + $0x18] sm:$0xff] }
0x11b2   :  { %v2836_v31 = vpack.c.bf16 %v1574_v29, %v1573_v27 }
0x11bb   :  { %v2925_v34 = vpop.eup %2924 }
0x11bc   :  { %993 = vrot.lane.b32.xlu0 %v2925_v34, %s3117_s3  ;;  %v989_v35 = vmul.f32 0.5, %v2925_v34  ;;  %v1719_v34 = vld [vmem:[%s3737_s9] sm:$0xff] }
0x11be   :  { %v990_v37 = vadd.f32 0.5, %v989_v35  ;;  %v1720_v35 = vld [vmem:[%s3737_s9 + $0x8] sm:$0xff] }
0x11c0   :  { %v991_v45 = vmul.f32 %v990_v37, %v899_v25  ;;  %v1126_v25 = vld [vmem:[%s3733_s5 + $0x50] sm:$0xff] }
0x11c1   :  { %v2828_v30 = vpack.c.bf16 %v1127_v26, %v1126_v25 }
0x122e   :  { %v994_v40 = vpop.permute.xlu0 %993 }
0x122f   :  { %v996_v38 = vmul.f32 %v994_v40, %v990_v37  ;;  %v2362_v40 = vld [vmem:[%s3734_s6] ss:$0 sm:$0xff] }
0x1231   :  { %998 = vrot.lane.b32.xlu1 %v996_v38, %s3117_s3 }
0x12a3   :  { %v999_v47 = vpop.permute.xlu1 %998 }
0x12a4   :  { %v1001_v49 = vadd.f32 %v999_v47, %v991_v45 }
0x12a6   :  { %2926 = vtanh.f32 %v1001_v49 }
0x12b0   :  { %v2927_v50 = vpop.eup %2926 }
0x12b1   :  { %1004 = vrot.lane.b32.xlu0 %v2927_v50, %s3117_s3 }
0x1323   :  { %v1005_v24 = vpop.permute.xlu0 %1004 }
0x1324   :  { %v1007_v46 = vmul.f32 %v1005_v24, %v990_v37  ;;  %v2840_v37 = vpack.c.bf16 %v1720_v35, %v1719_v34 }
0x1326   :  { %1009 = vrot.lane.b32.xlu1 %v1007_v46, %s3118_s17 }
0x1398   :  { %v1010_v51 = vpop.permute.xlu1 %1009 }
0x1399   :  { %1012 = vst.msk [vmem:[#allocation3 + $0x38] sm:$0xff] %vm385_vm4, %v1010_v51  ;;  %2631 = vmatmul.mubr.msk.f32.vlgmr.msra.gmra.mrb[8].mxu1 %vm263_vm3, %v1010_v51 }
0x139a   :  { %1013 = vst.msk [vmem:[#allocation3 + $0x10] sm:$0xff] %vm388_vm5, %v1010_v51  ;;  %2835 = vmatpush3.bf16.msra.mxu1 %v2832_v12 }
0x139b   :  { %2837 = vmatprep.subr.bf16.mxu1 %v2836_v31 }
0x139e   :  { %2839 = vmatpush3.bf16.msra.mxu1 %v2836_v31 }
0x139f   :  { %2841 = vmatprep.subr.bf16.mxu1 %v2840_v37 }
0x13a0   :  { %v1143_v14 = vld [vmem:[#allocation3 + $0x38] sm:$0xff] }
0x13a1   :  { %v1138_v18 = vld [vmem:[#allocation3 + $0x10] sm:$0xff] }
0x146c   :  { %v1085_v52 = vpop.f32.mrb[8].mxu1 }
0x146d   :  { %v1089_v53 = vadd.f32 %v1085_v52, %v1016_v48  ;;  %v2632_v54 = vpop.f32.mrb[9].mxu1 }
0x146f   :  { %2928 = vtanh.f32 %v1089_v53 }
0x1479   :  { %v2929_v55 = vpop.eup %2928 }
0x147a   :  { %1095 = vrot.lane.b32.xlu0 %v2929_v55, %s3117_s3  ;;  %v1091_v56 = vmul.f32 0.5, %v2929_v55 }
0x147c   :  { %v1092_v57 = vadd.f32 0.5, %v1091_v56 }
0x147e   :  { %v1093_v60 = vmul.f32 %v1092_v57, %v1001_v49 }
0x14ec   :  { %v1096_v58 = vpop.permute.xlu0 %1095 }
0x14ed   :  { %v1098_v59 = vmul.f32 %v1096_v58, %v1092_v57 }
0x14ef   :  { %1100 = vrot.lane.b32.xlu1 %v1098_v59, %s3117_s3 }
0x1561   :  { %v1101_v61 = vpop.permute.xlu1 %1100 }
0x1562   :  { %v1103_v41 = vadd.f32 %v1101_v61, %v1093_v60  ;;  %v1721_v60 = vld [vmem:[%s3737_s9 + $0x10] sm:$0xff]  ;;  %v1722_v61 = vld [vmem:[%s3737_s9 + $0x18] sm:$0xff] }
0x1564   :  { %2930 = vtanh.f32 %v1103_v41  ;;  %v2844_v41 = vpack.c.bf16 %v1722_v61, %v1721_v60 }
0x156e   :  { %v2931_v48 = vpop.eup %2930 }
0x156f   :  { %1106 = vrot.lane.b32.xlu0 %v2931_v48, %s3117_s3 }
0x15e1   :  { %v1107_v7 = vpop.permute.xlu0 %1106 }
0x15e2   :  { %v1109_v8 = vmul.f32 %v1107_v7, %v1092_v57 }
0x15e4   :  { %1111 = vrot.lane.b32.xlu1 %v1109_v8, %s3118_s17 }
0x1656   :  { %v1112_v13 = vpop.permute.xlu1 %1111 }
0x1657   :  { %1114 = vst.msk [vmem:[#allocation3 + $0x40] sm:$0xff] %vm385_vm4, %v1112_v13 }
0x1658   :  { %1115 = vst.msk [vmem:[#allocation3 + $0x8] sm:$0xff] %vm388_vm5, %v1112_v13 }
0x165e   :  { %v1288_v33 = vld [vmem:[#allocation3 + $0x40] sm:$0xff] }
0x165f   :  { %v1137_v15 = vld [vmem:[#allocation3 + $0x8] sm:$0xff] }
0x1660   :  { %2642 = vmatmul.mubr.msk.f32.vlgmr.msra.gmra.mrb[14].mxu0 %vm263_vm3, %v1137_v15 }
0x1661   :  { %2819 = vmatpush3.bf16.msra.mxu0 %v2816_v6  ;;  %2644 = vmatprep.mubr.msk.f32.mxu0 %vm263_vm3, %v1138_v18 }
0x1662   :  { %2821 = vmatprep.subr.bf16.mxu0 %v2820_v42 }
0x1664   :  { %2645 = vmatmul.mubr.msk.f32.gmra.mrb[16].mxu0 %vm263_vm3, %v1139_v19 }
0x1665   :  { %2647 = vmatprep.mubr.msk.f32.mxu0 %vm263_vm3, %v1140_v20  ;;  %2823 = vmatpush3.bf16.msra.mxu0 %v2820_v42 }
0x1666   :  { %2825 = vmatprep.subr.bf16.mxu0 %v2824_v9 }
0x1668   :  { %2648 = vmatmul.mubr.msk.f32.gmra.mrb[18].mxu0 %vm263_vm3, %v1141_v22 }
0x1669   :  { %2650 = vmatprep.mubr.msk.f32.mxu0 %vm263_vm3, %v1142_v23 }
0x166c   :  { %2651 = vmatmul.mubr.msk.f32.gmra.mrb[20].mxu0 %vm263_vm3, %v1143_v14 }
0x166d   :  { %2661 = vmatprep.mubr.msk.f32.mxu0 %vm263_vm3, %v1137_v15 }
0x1670   :  { %2662 = vmatmul.mubr.msk.f32.vlgmr.msra.gmra.mrb[14].mxu0 %vm263_vm3, %v1138_v18 }
0x1671   :  { %2827 = vmatpush3.bf16.msra.mxu0 %v2824_v9  ;;  %2664 = vmatprep.mubr.msk.f32.mxu0 %vm263_vm3, %v1139_v19 }
0x1672   :  { %2829 = vmatprep.subr.bf16.mxu0 %v2828_v30 }
0x1674   :  { %2665 = vmatmul.mubr.msk.f32.gmra.mrb[16].mxu0 %vm263_vm3, %v1140_v20 }
0x1675   :  { %2667 = vmatprep.mubr.msk.f32.mxu0 %vm263_vm3, %v1141_v22  ;;  %2831 = vmatpush3.bf16.msra.mxu0 %v2828_v30 }
0x1676   :  { %2854 = vmatprep.subr.bf16.mxu0 %v3114_v1 }
0x1678   :  { %2668 = vmatmul.mubr.msk.f32.gmra.mrb[18].mxu0 %vm263_vm3, %v1142_v23 }
0x1679   :  { %2670 = vmatprep.mubr.msk.f32.mxu0 %vm263_vm3, %v1143_v14 }
0x167c   :  { %2671 = vmatmul.mubr.msk.f32.gmra.mrb[20].mxu0 %vm263_vm3, %v1288_v33 }
0x167d   :  { %2681 = vmatprep.mubr.msk.f32.mxu0 %vm263_vm3, %v1138_v18 }
0x1680   :  { %2682 = vmatmul.mubr.msk.f32.vlgmr.msra.gmra.mrb[14].mxu0 %vm263_vm3, %v1139_v19 }
0x1681   :  { %2684 = vmatprep.mubr.msk.f32.mxu0 %vm263_vm3, %v1140_v20  ;;  %v2059_v20 = vld [vmem:[%s3729_s1] sm:$0xff] }
0x1684   :  { %2685 = vmatmul.mubr.msk.f32.gmra.mrb[16].mxu0 %vm263_vm3, %v1141_v22  ;;  %v3119_v22 = vmov 0  }
0x1685   :  { %2687 = vmatprep.mubr.msk.f32.mxu0 %vm263_vm3, %v1142_v23  ;;  %2899 = vset.pattern.permute.xlu1 %v3119_v22 }
0x1686   :  { %2898 = vset.pattern.permute.xlu0 %v3119_v22 }
0x1688   :  { %2688 = vmatmul.mubr.msk.f32.gmra.mrb[18].mxu0 %vm263_vm3, %v1143_v14 }
0x1689   :  { %2690 = vmatprep.mubr.msk.f32.mxu0 %vm263_vm3, %v1288_v33 }
0x168c   :  { %2691 = vmatmul.mubr.msk.f32.gmra.mrb[20].mxu0 %vm263_vm3, %v1433_v39 }
0x168d   :  { %2757 = vmatprep.mubr.msk.f32.mxu0 %vm3115_vm0, %v3116_v2 }
0x1753   :  { %v2683_v38 = vpop.f32.mrb[14].mxu0 }
0x1754   :  { %v1524_v45 = vpop.f32.mrb[15].mxu0  ;;  %v3568_v49 = vadd.f32 %v2683_v38, %v2362_v40 }
0x1755   :  { %v3566_v47 = vadd.f32 %v2362_v40, %v1524_v45 }
0x1757   :  { %v2686_v50 = vpop.f32.mrb[16].mxu0  ;;  %2701 = vmatprep.mubr.msk.f32.mxu1 %vm263_vm3, %v3566_v47 }
0x1758   :  { %v1534_v24 = vpop.f32.mrb[17].mxu0  ;;  %2702 = vmatmul.mubr.msk.f32.vlgmr.msra.gmra.mrb[10].mxu1 %vm263_vm3, %v3568_v49  ;;  %v3576_v51 = vadd.f32 %v2686_v50, %v2362_v40 }
0x1759   :  { %v3574_v46 = vadd.f32 %v2362_v40, %v1534_v24  ;;  %2843 = vmatpush3.bf16.msra.mxu1 %v2840_v37 }
0x175a   :  { %2845 = vmatprep.subr.bf16.mxu1 %v2844_v41 }
0x175b   :  { %v2689_v52 = vpop.f32.mrb[18].mxu0  ;;  %2704 = vmatprep.mubr.msk.f32.mxu1 %vm263_vm3, %v3574_v46 }
0x175c   :  { %v1544_v53 = vpop.f32.mrb[19].mxu0  ;;  %2705 = vmatmul.mubr.msk.f32.gmra.mrb[12].mxu1 %vm263_vm3, %v3576_v51  ;;  %v3584_v55 = vadd.f32 %v2689_v52, %v2362_v40 }
0x175d   :  { %v3582_v54 = vadd.f32 %v2362_v40, %v1544_v53  ;;  %2847 = vmatpush3.bf16.msra.mxu1 %v2844_v41 }
0x175e   :  { %2733 = vmatprep.subr.mxu1 %v3116_v2 }
0x175f   :  { %v2692_v56 = vpop.f32.mrb[20].mxu0  ;;  %2707 = vmatprep.mubr.msk.f32.mxu1 %vm263_vm3, %v3582_v54 }
0x1760   :  { %v1554_v57 = vpop.f32.mrb[21].mxu0  ;;  %2708 = vmatmul.mubr.msk.f32.gmra.mrb[14].mxu1 %vm263_vm3, %v3584_v55  ;;  %v3592_v59 = vadd.f32 %v2692_v56, %v2362_v40 }
0x1761   :  { %v3590_v58 = vadd.f32 %v2362_v40, %v1554_v57 }
0x1763   :  { %2710 = vmatprep.mubr.msk.f32.mxu1 %vm263_vm3, %v3590_v58 }
0x1764   :  { %2711 = vmatmul.mubr.msk.f32.gmra.mrb[16].mxu1 %vm263_vm3, %v3592_v59 }
0x182b   :  { %v2703_v43 = vpop.f32.mrb[10].mxu1 }
0x182c   :  { %v1678_v44 = vadd.f32 %v2703_v43, %v2387_v32  ;;  %v1672_v48 = vpop.f32.mrb[11].mxu1 }
0x182d   :  { %v1673_v62 = vadd.f32 %v2387_v32, %v1672_v48 }
0x182f   :  { %2932 = vtanh.f32 %v1673_v62  ;;  %v2706_v63 = vpop.f32.mrb[12].mxu1 }
0x1830   :  { %2934 = vtanh.f32 %v1678_v44  ;;  %v1688_v0 = vadd.f32 %v2706_v63, %v2387_v32  ;;  %v1682_v3 = vpop.f32.mrb[13].mxu1 }
0x1831   :  { %v1683_v4 = vadd.f32 %v2387_v32, %v1682_v3 }
0x1833   :  { %2936 = vtanh.f32 %v1683_v4  ;;  %v2709_v5 = vpop.f32.mrb[14].mxu1 }
0x1834   :  { %2938 = vtanh.f32 %v1688_v0  ;;  %v1698_v6 = vadd.f32 %v2709_v5, %v2387_v32  ;;  %v1692_v7 = vpop.f32.mrb[15].mxu1 }
0x1835   :  { %v1693_v8 = vadd.f32 %v2387_v32, %v1692_v7 }
0x1837   :  { %2940 = vtanh.f32 %v1693_v8  ;;  %v2712_v10 = vpop.f32.mrb[16].mxu1 }
0x1838   :  { %2942 = vtanh.f32 %v1698_v6  ;;  %v1708_v11 = vadd.f32 %v2712_v10, %v2387_v32  ;;  %v1702_v12 = vpop.f32.mrb[17].mxu1 }
0x1839   :  { %v2933_v13 = vpop.eup %2932  ;;  %v1703_v28 = vadd.f32 %v2387_v32, %v1702_v12 }
0x183a   :  { %v2935_v42 = vpop.eup %2934  ;;  %2721 = vmatprep.mubr.msk.f32.mxu1 %vm263_vm3, %v2933_v13 }
0x183b   :  { %2944 = vtanh.f32 %v1703_v28  ;;  %2722 = vmatmul.mubr.msk.f32.vlgmr.msra.gmra.mrb[18].mxu1 %vm263_vm3, %v2935_v42 }
0x183c   :  { %2946 = vtanh.f32 %v1708_v11  ;;  %2734 = vmatpush3.msk.msra.mxu1 %vm2072_vm6, %v2060_v36 }
0x183d   :  { %v2937_v15 = vpop.eup %2936  ;;  %2848 = vmatprep.subr.bf16.mxu1 %v3114_v1 }
0x183e   :  { %v2939_v16 = vpop.eup %2938  ;;  %2724 = vmatprep.mubr.msk.f32.mxu1 %vm263_vm3, %v2937_v15 }
0x183f   :  { %2725 = vmatmul.mubr.msk.f32.gmra.mrb[20].mxu1 %vm263_vm3, %v2939_v16 }
0x1841   :  { %v2941_v17 = vpop.eup %2940 }
0x1842   :  { %v2943_v18 = vpop.eup %2942  ;;  %2727 = vmatprep.mubr.msk.f32.mxu1 %vm263_vm3, %v2941_v17 }
0x1843   :  { %2728 = vmatmul.mubr.msk.f32.gmra.mrb[22].mxu1 %vm263_vm3, %v2943_v18 }
0x1845   :  { %v2945_v9 = vpop.eup %2944 }
0x1846   :  { %v2947_v19 = vpop.eup %2946  ;;  %2730 = vmatprep.mubr.msk.f32.mxu1 %vm263_vm3, %v2945_v9 }
0x1847   :  { %2731 = vmatmul.mubr.msk.f32.gmra.mrb[24].mxu1 %vm263_vm3, %v2947_v19 }
0x1848   :  { %2735 = vmatprep.mubr.msk.f32.mxu1 %vm3115_vm0, %v3116_v2 }
0x184b   :  { %2736 = vmatmul.mubr.msk.f32.vlgmr.msra.gmra.mrb[26].mxu1 %vm2068_vm7, %v2059_v20 }
0x184c   :  { %2746 = vmatprep.mubr.msk.f32.mxu1 %vm3115_vm0, %v3116_v2 }
0x190e   :  { %v2723_v23 = vpop.f32.mrb[18].mxu1 }
0x190f   :  { %v1813_v14 = vpop.f32.mrb[19].mxu1  ;;  %v1854_v33 = vsel %vm1852_vm8, %v2723_v23, -inf }
0x1910   :  { %v1853_v29 = vsel %vm1852_vm8, %v1813_v14, -inf }
0x1912   :  { %v2726_v25 = vpop.f32.mrb[20].mxu1 }
0x1913   :  { %v1823_v26 = vpop.f32.mrb[21].mxu1  ;;  %v1856_v37 = vsel %vm1852_vm8, %v2726_v25, -inf }
0x1914   :  { %v1855_v50 = vsel %vm1852_vm8, %v1823_v26, -inf }
0x1916   :  { %v2729_v30 = vpop.f32.mrb[22].mxu1 }
0x1917   :  { %v1859_v39 = vsel %vm1852_vm8, %v2729_v30, -inf  ;;  %v1833_v27 = vpop.f32.mrb[23].mxu1 }
0x1918   :  { %v1860_v31 = vmax.f32 %v1854_v33, %v1859_v39  ;;  %v1857_v34 = vsel %vm1852_vm8, %v1833_v27, -inf }
0x1919   :  { %v1858_v2 = vmax.f32 %v1853_v29, %v1857_v34 }
0x191a   :  { %v2732_v35 = vpop.f32.mrb[24].mxu1 }
0x191b   :  { %v1865_v40 = vmax.f32 %v1858_v2, %v1860_v31  ;;  %v1863_v38 = vsel %vm1852_vm8, %v2732_v35, -inf  ;;  %v1843_v45 = vpop.f32.mrb[25].mxu1 }
0x191c   :  { %v1864_v24 = vmax.f32 %v1856_v37, %v1863_v38  ;;  %v1861_v52 = vsel %vm1852_vm8, %v1843_v45, -inf }
0x191d   :  { %v1862_v53 = vmax.f32 %v1855_v50, %v1861_v52  ;;  %v2148_v50 = vld [vmem:[%s3740_s12] sm:$0xff] }
0x191f   :  { %v1866_v56 = vmax.f32 %v1862_v53, %v1864_v24  ;;  %v2149_v24 = vld [vmem:[%s3740_s12 + $0x8] sm:$0xff]  ;;  %v2152_v53 = vld [vmem:[%s3740_s12 + $0x20] sm:$0xff] }
0x1920   :  { %v2855_v52 = vpack.c.bf16 %v2149_v24, %v2148_v50 }
0x1921   :  { %v1867_v57 = vmax.f32 %v1865_v40, %v1866_v56  ;;  %v2153_v56 = vld [vmem:[%s3740_s12 + $0x28] sm:$0xff] }
0x1922   :  { %2856 = vmatpush3.bf16.msra.mxu0 %v2855_v52 }
0x1923   :  { %v1868_v60 = vsub.f32 %v1813_v14, %v1867_v57  ;;  %v1869_v61 = vsub.f32 %v2723_v23, %v1867_v57  ;;  %v1870_v41 = vsub.f32 %v1823_v26, %v1867_v57  ;;  %v1871_v32 = vsub.f32 %v2726_v25, %v1867_v57  ;;  %2857 = vmatprep.subr.bf16.mxu0 %v3114_v1 }
0x1924   :  { %v1872_v43 = vsub.f32 %v1833_v27, %v1867_v57  ;;  %v1873_v44 = vsub.f32 %v2729_v30, %v1867_v57  ;;  %v1874_v48 = vsub.f32 %v1843_v45, %v1867_v57  ;;  %v1875_v62 = vsub.f32 %v2732_v35, %v1867_v57  ;;  %v2150_v57 = vld [vmem:[%s3740_s12 + $0x10] sm:$0xff] }
0x1925   :  { %v1876_v63 = vmul.f32 1.442695, %v1868_v60  ;;  %v1878_v0 = vmul.f32 1.442695, %v1869_v61  ;;  %v1880_v3 = vmul.f32 1.442695, %v1870_v41  ;;  %v2849_v60 = vpack.c.bf16 %v2153_v56, %v2152_v53 }
0x1926   :  { %v1882_v4 = vmul.f32 1.442695, %v1871_v32  ;;  %v1884_v5 = vmul.f32 1.442695, %v1872_v43  ;;  %v1886_v6 = vmul.f32 1.442695, %v1873_v44 }
0x1927   :  { %2948 = vpow2.f32 %v1876_v63  ;;  %v1888_v7 = vmul.f32 1.442695, %v1874_v48  ;;  %v1890_v8 = vmul.f32 1.442695, %v1875_v62  ;;  %v2151_v61 = vld [vmem:[%s3740_s12 + $0x18] sm:$0xff]  ;;  %2850 = vmatpush3.bf16.msra.mxu1 %v2849_v60  ;;  %v2142_v43 = vpop.f32.mrb[26].mxu1 }
0x1928   :  { %2950 = vpow2.f32 %v1878_v0  ;;  %v2858_v41 = vpack.c.bf16 %v2151_v61, %v2150_v57  ;;  %v2404_v32 = vld [vmem:[%s3739_s11] ss:$0 sm:$0xff]  ;;  %2851 = vmatprep.subr.bf16.mxu1 %v3114_v1  ;;  %v2154_v44 = vld [vmem:[%s3740_s12 + $0x30] sm:$0xff]  ;;  %v2155_v48 = vld [vmem:[%s3740_s12 + $0x38] sm:$0xff]  ;;  %v2737_v63 = vpop.f32.mrb[27].mxu1  ;;  %s3120_s11 = smov [#allocation14]  }
0x1929   :  { %2952 = vpow2.f32 %v1880_v3  ;;  %v2143_v62 = vadd.f32 %v2404_v32, %v2142_v43  ;;  %v2852_v0 = vpack.c.bf16 %v2155_v48, %v2154_v44  ;;  %s2329_s12 = sshll.u32 %s3120_s11, 4  ;;  %s2330_s12 = int_to_ptr.vmem [resolvable:$true] %s2329_s12 }
0x192a   :  { %2954 = vpow2.f32 %v1882_v4  ;;  %2859 = vmatpush3.bf16.msra.mxu0 %v2858_v41  ;;  %s3054_s7 = scalar_lea.vmem %s2330_s12, 128  ;;  %p3059_p5 = scmp.lt.s32.totalorder %s2330_s12, %s2330_s12 }
0x192b   :  { %2956 = vpow2.f32 %v1884_v5  ;;  %v2146_v3 = vmax.f32 %v2143_v62, 0.0  ;;  %2853 = vmatpush3.bf16.msra.mxu1 %v2852_v0  ;;  %p3055_p4 = scmp.ne.s32.totalorder %s2330_s12, %s3054_s7  ;;  %p3060_p6 = scmp.lt.s32.totalorder %s3054_s7, %s3054_s7 }
0x192c   :  { %2958 = vpow2.f32 %v1886_v6 }
0x192d   :  { %2960 = vpow2.f32 %v1888_v7  ;;  %2147 = vst.msk [vmem:[#allocation14] sm:$0xff] %vm263_vm3, %v2146_v3  ;;  %p3061_p7 = por %p3060_p6, %p3059_p5 }
0x192e   :  { %2962 = vpow2.f32 %v1890_v8  ;;  %2747 = vmatmul.mubr.msk.f32.vlgmr.msra.gmra.mrb[28].mxu1 %vm263_vm3, %v2146_v3 }
0x192f   :  { %p3062_p8 = pnand %p3061_p7, %p3055_p4 }
0x1931   :  { %v2949_v10 = vpop.eup %2948 }
0x1932   :  { %v2951_v11 = vpop.eup %2950  ;;  %v1892_v12 = vsel %vm1852_vm8, %v2949_v10, 0.0 }
0x1933   :  { %v2953_v13 = vpop.eup %2952  ;;  %v1893_v28 = vsel %vm1852_vm8, %v2951_v11, 0.0 }
0x1934   :  { %v2955_v36 = vpop.eup %2954  ;;  %v1894_v42 = vadd.f32 %v1893_v28, %v1892_v12  ;;  %v1895_v15 = vsel %vm1852_vm8, %v2953_v13, 0.0 }
0x1935   :  { %v2957_v16 = vpop.eup %2956  ;;  %v1897_v18 = vsel %vm1852_vm8, %v2955_v36, 0.0 }
0x1936   :  { %v1896_v17 = vadd.f32 %v1895_v15, %v1894_v42  ;;  %v2959_v9 = vpop.eup %2958  ;;  %v1899_v20 = vsel %vm1852_vm8, %v2957_v16, 0.0 }
0x1937   :  { %v2961_v22 = vpop.eup %2960  ;;  %v1901_v14 = vsel %vm1852_vm8, %v2959_v9, 0.0 }
0x1938   :  { %v1898_v19 = vadd.f32 %v1897_v18, %v1896_v17  ;;  %v2963_v25 = vpop.eup %2962  ;;  %v1903_v30 = vsel %vm1852_vm8, %v2961_v22, 0.0 }
0x1939   :  { %v1905_v39 = vsel %vm1852_vm8, %v2963_v25, 0.0 }
0x193a   :  { %v1900_v23 = vadd.f32 %v1899_v20, %v1898_v19 }
0x193c   :  { %v1902_v26 = vadd.f32 %v1901_v14, %v1900_v23 }
0x193e   :  { %v1904_v33 = vadd.f32 %v1903_v30, %v1902_v26 }
0x1940   :  { %v1906_v27 = vadd.f32 %v1905_v39, %v1904_v33 }
0x1942   :  { %2964 = vrcp.f32 %v1906_v27 }
0x194c   :  { %v2965_v29 = vpop.eup %2964 }
0x194d   :  { %v1909_v31 = vmul.f32 %v2965_v29, %v2951_v11  ;;  %v1908_v34 = vmul.f32 %v2965_v29, %v2949_v10  ;;  %v1910_v2 = vmul.f32 %v2965_v29, %v2953_v13  ;;  %v1911_v35 = vmul.f32 %v2965_v29, %v2955_v36 }
0x194e   :  { %v1912_v37 = vmul.f32 %v2965_v29, %v2957_v16  ;;  %v1913_v40 = vmul.f32 %v2965_v29, %v2959_v9  ;;  %v1914_v38 = vmul.f32 %v2965_v29, %v2961_v22  ;;  %v1915_v45 = vmul.f32 %v2965_v29, %v2963_v25 }
0x194f   :  { %1923 = vperm.xlu1 %2899, %v1909_v31   ;;  %1918 = vperm.xlu0 %2898, %v1908_v34  }
0x1953   :  { %1928 = vperm.xlu1 %2899, %v1910_v2   ;;  %1933 = vperm.xlu0 %2898, %v1911_v35  }
0x1957   :  { %1938 = vperm.xlu1 %2899, %v1912_v37   ;;  %1943 = vperm.xlu0 %2898, %v1913_v40  }
0x195b   :  { %1948 = vperm.xlu1 %2899, %v1914_v38   ;;  %1953 = vperm.xlu0 %2898, %v1915_v45  }
0x19ce   :  { %v1924_v4 = vpop.permute.xlu1 %1923  ;;  %v1919_v5 = vpop.permute.xlu0 %1918 }
0x19cf   :  { %v1957_v1 = vmul.f32 %v3568_v49, %v1924_v4  ;;  %v1956_v6 = vmul.f32 %v3566_v47, %v1919_v5  ;;  %v1986_v7 = vrot.slane %v1924_v4, %v3323_v21  ;;  %v1982_v8 = vrot.slane %v1919_v5, %v3323_v21 }
0x19d1   :  { %v1965_v10 = vsel %vm263_vm3, %v1957_v1, 0.0  ;;  %v1964_v11 = vsel %vm263_vm3, %v1956_v6, 0.0  ;;  %v2012_v47 = vsel %vm2011_vm9, %v1986_v7, %v1982_v8 }
0x19d2   :  { %v1929_v12 = vpop.permute.xlu1 %1928  ;;  %v1934_v13 = vpop.permute.xlu0 %1933  ;;  %v1966_v42 = vadd.f32 %v1965_v10, %v1964_v11 }
0x19d3   :  { %v1958_v28 = vmul.f32 %v3574_v46, %v1929_v12  ;;  %v1990_v36 = vrot.slane %v1929_v12, %v3323_v21  ;;  %v1959_v49 = vmul.f32 %v3576_v51, %v1934_v13  ;;  %v1994_v15 = vrot.slane %v1934_v13, %v3323_v21 }
0x19d5   :  { %v1967_v16 = vsel %vm263_vm3, %v1958_v28, 0.0  ;;  %v2014_v17 = vsel %vm2013_vm10, %v1990_v36, %v2012_v47  ;;  %v1969_v20 = vsel %vm263_vm3, %v1959_v49, 0.0 }
0x19d6   :  { %v1968_v18 = vadd.f32 %v1967_v16, %v1966_v42  ;;  %v1939_v9 = vpop.permute.xlu1 %1938  ;;  %v1944_v19 = vpop.permute.xlu0 %1943  ;;  %v2016_v14 = vsel %vm2015_vm11, %v1994_v15, %v2014_v17 }
0x19d7   :  { %v1960_v46 = vmul.f32 %v3582_v54, %v1939_v9  ;;  %v1998_v22 = vrot.slane %v1939_v9, %v3323_v21  ;;  %v1961_v51 = vmul.f32 %v3584_v55, %v1944_v19  ;;  %v2002_v25 = vrot.slane %v1944_v19, %v3323_v21 }
0x19d8   :  { %v1970_v23 = vadd.f32 %v1969_v20, %v1968_v18 }
0x19d9   :  { %v1971_v26 = vsel %vm263_vm3, %v1960_v46, 0.0  ;;  %v2018_v30 = vsel %vm2017_vm12, %v1998_v22, %v2016_v14  ;;  %v1973_v39 = vsel %vm263_vm3, %v1961_v51, 0.0 }
0x19da   :  { %v1972_v33 = vadd.f32 %v1971_v26, %v1970_v23  ;;  %v1949_v27 = vpop.permute.xlu1 %1948  ;;  %v1954_v29 = vpop.permute.xlu0 %1953  ;;  %v2020_v35 = vsel %vm2019_vm13, %v2002_v25, %v2018_v30 }
0x19db   :  { %v1962_v54 = vmul.f32 %v3590_v58, %v1949_v27  ;;  %v2006_v31 = vrot.slane %v1949_v27, %v3323_v21  ;;  %v1963_v55 = vmul.f32 %v3592_v59, %v1954_v29  ;;  %v2010_v34 = vrot.slane %v1954_v29, %v3323_v21 }
0x19dc   :  { %v1974_v2 = vadd.f32 %v1973_v39, %v1972_v33 }
0x19dd   :  { %v1975_v37 = vsel %vm263_vm3, %v1962_v54, 0.0  ;;  %v2022_v40 = vsel %vm2021_vm14, %v2006_v31, %v2020_v35  ;;  %v1977_v50 = vsel %vm263_vm3, %v1963_v55, 0.0 }
0x19de   :  { %v1976_v38 = vadd.f32 %v1975_v37, %v1974_v2  ;;  %v2024_v45 = vsel %vm2023_vm15, %v2010_v34, %v2022_v40 }
0x19df   :  { %2026 = vxpose.xlu1.b32.start.end [1/1] (short) (narrow) %v2024_v45, 8 }
0x19e0   :  { %v1978_v24 = vadd.f32 %v1977_v50, %v1976_v38 }
0x19e2   :  { %2758 = vmatmul.mubr.msk.f32.vlgmr.msra.gmra.mrb[22].mxu0 %vm263_vm3, %v1978_v24 }
0x1a01   :  { %v2225_v58 = vpop.f32.mrb[28].mxu1 }
0x1a02   :  { %v2748_v52 = vpop.f32.mrb[29].mxu1 }
0x1a03   :  { %3065 = shalt.err (!%p3062_p8)
}
0x1a04   :  { %s3066_s21 = scalar_lea.hbm %s3744_s16, 128 }
0x1a05   :  { %p3067_p9 = scmp.ne.s32.totalorder %s3744_s16, %s3066_s21  ;;  %p3070_p10 = scmp.lt.u32.totalorder %s3066_s21, %s3744_s16 }
0x1a07   :  { %p3072_p11 = pnand %p3070_p10, %p3067_p9 }
0x1a09   :  { %3075 = shalt.err (!%p3072_p11)
}
0x1a0a   :  { %2332 = dma.vmem_to_hbm [thread:$0]  %s2330_s12, 128, %s3744_s16, [#allocation15]  }
0x1a0b   :  { %s3121_s23 = smov [#allocation13]  }
0x1a0c   :  { %s2319_s13 = sshll.u32 %s3121_s23, 4  ;;  %s2320_s13 = int_to_ptr.vmem [resolvable:$true] %s2319_s13 }
0x1a0d   :  { %s3076_s3 = scalar_lea.vmem %s2320_s13, 128  ;;  %p3081_p13 = scmp.lt.s32.totalorder %s2320_s13, %s2320_s13 }
0x1a0e   :  { %p3077_p12 = scmp.ne.s32.totalorder %s2320_s13, %s3076_s3  ;;  %p3082_p0 = scmp.lt.s32.totalorder %s3076_s3, %s3076_s3 }
0x1a10   :  { %p3083_p1 = por %p3082_p0, %p3081_p13 }
0x1a12   :  { %p3084_p2 = pnand %p3083_p1, %p3077_p12 }
0x1a5f   :  { %v2042_v21 = vpop.trf.xlu1 }
0x1a60   :  { %2058 = vst.msk [vmem:[#allocation13] sm:$0xff] %vm121_vm1, %v2042_v21 }
0x1a61   :  { %3087 = shalt.err (!%p3084_p2)
}
0x1a62   :  { %s3088_s20 = scalar_lea.hbm %s3743_s15, 128 }
0x1a63   :  { %p3089_p3 = scmp.ne.s32.totalorder %s3743_s15, %s3088_s20  ;;  %p3092_p4 = scmp.lt.u32.totalorder %s3088_s20, %s3743_s15 }
0x1a65   :  { %p3094_p5 = pnand %p3092_p4, %p3089_p3 }
0x1a67   :  { %3097 = shalt.err (!%p3094_p5)
}
0x1a68   :  { %2322 = dma.vmem_to_hbm [thread:$0]  %s2320_s13, 128, %s3743_s15, [#allocation7]   ;;  %v2409_v53 = vld [vmem:[#allocation4] ss:$0 sm:$0xff] }
0x1ab5   :  { %v2298_v59 = vpop.f32.mrb[22].mxu0 }
0x1ab6   :  { %v2299_v56 = vadd.f32 %v2298_v59, %v2225_v58  ;;  %v2759_v57 = vpop.f32.mrb[23].mxu0 }
0x1ab8   :  { %v2309_v60 = vadd.f32 %v2409_v53, %v2299_v56 }
0x1aba   :  { %2310 = vst.msk [vmem:[%s3742_s14] sm:$0xff] %vm1852_vm8, %v2309_v60 }
0x1abb   :  { %3104 = dma.done.wait [#allocation7], 128  }
0x1abc   :  { %3105 = vsyncadd [#allocation7], 4294967168 }
0x1abd   :  { %3106 = dma.done.wait [#allocation15], 128  }
0x1abe   :  { %3107 = vsyncadd [#allocation15], 4294967168 }
0x1abf   :  { %2341 = vsyncpa [#allocation6], 1 }
0x1ac0   :  { %2342 = vsyncpa [#allocation9], 1 }
0x1ac1   :  { %2343 = vsyncpa [#allocation12], 1 }
0x1ac2   :  { %2344 = vsyncpa [#allocation7], 1 }
0x1ac3   :  { %2345 = vsyncpa [#allocation15], 1 }

</bundles_post_ra>
